<compile_context>
chip_gen: v7x
topology: tpu7x:2x2x1
jax: 0.10.0
libtpu: 0.0.40
codegen_flags: <defaults>
</compile_context>

<pallas_src>
import jax
import jax.numpy as jnp
from jax.experimental import pallas as pl
from jax.experimental.pallas import tpu as pltpu


# ------------------------------ kernel factory --------------------------------
def _make_gcn_kernel(C, L, V, n_static, order):
    """Build the fused gcn kernel for fixed (C, L, V, #static supports, order)."""
    n_terms = order * (n_static + 1) + 1  # x + order hops per support

    def kernel(x_ref, a_ref, nv1_ref, nv2_ref, w_ref, b_ref, out_ref, hmat_ref):
        # x_ref   : (L*C, V)   one batch element, rows ordered (l, c), cols = node
        # a_ref   : (n_static, V, V) static supports (original orientation)
        # nv1_ref : (V, E), nv2_ref : (E, V)  adaptive-adjacency factors
        # w_ref   : (C_out, n_terms*C) 1x1 conv weight
        # b_ref   : (C_out, 1) bias
        # out_ref : (C_out, L*V)  lane-dense output block
        # hmat_ref: VMEM scratch (n_terms*C, L*V)

        # ---- adaptive adjacency: softmax(relu(nv1 @ nv2), dim=1), fused ----
        m = jnp.dot(nv1_ref[...], nv2_ref[...], preferred_element_type=jnp.float32)
        m = jnp.maximum(m, 0.0)
        m = m - jnp.max(m, axis=1, keepdims=True)
        e = jnp.exp(m)
        adp = e / jnp.sum(e, axis=1, keepdims=True)           # (V, V)

        def scatter(term_idx, h):
            # h: (L*C, V) with rows (l, c)  ->  hmat rows (term, c), cols (l, v)
            r0 = term_idx * C
            for l in range(L):
                hmat_ref[r0:r0 + C, l * V:(l + 1) * V] = h[l * C:(l + 1) * C, :]

        # ---- graph propagation: canonical x @ A matmuls, M = L*C ----
        scatter(0, x_ref[...])
        term = 1
        for s in range(n_static + 1):
            a = adp if s == n_static else a_ref[s]            # adaptive support last
            prev = x_ref[...]
            for _ in range(order):
                prev = jnp.dot(prev, a, preferred_element_type=jnp.float32)
                scatter(term, prev)
                term += 1

        # ---- 1x1 conv as ONE K = n_terms*C matmul (+ bias) ----
        y = jnp.dot(w_ref[...], hmat_ref[...], preferred_element_type=jnp.float32)
        out_ref[...] = (y + b_ref[...]).astype(out_ref.dtype)

    return kernel


# --------------------------------- wrapper ------------------------------------
def gwnet_forward(x_nchw, supports, nodevec1, nodevec2, w_conv, b_conv, order=2):
    """x_nchw: (B, C, V, L) float32; returns (B, C_out, V, L) float32."""
    B, C, V, L = x_nchw.shape
    C_out = w_conv.shape[0]
    n_static = len(supports)
    n_terms = order * (n_static + 1) + 1
    assert w_conv.shape[1] == n_terms * C

    # (B, C, V, L) -> (B, L, C, V) -> (B, L*C, V): rows = (l, c), cols = node v.
    x = jnp.transpose(x_nchw, (0, 3, 1, 2)).reshape(B, L * C, V).astype(jnp.float32)
    A = jnp.stack(list(supports), axis=0).astype(jnp.float32)        # (n_static, V, V)
    w2 = w_conv.reshape(C_out, n_terms * C).astype(jnp.float32)      # (C_out, 7C)
    b2 = b_conv.reshape(C_out, 1).astype(jnp.float32)
    nv1 = nodevec1.astype(jnp.float32)
    nv2 = nodevec2.astype(jnp.float32)

    kernel = _make_gcn_kernel(C, L, V, n_static, order)

    out = pl.pallas_call(
        kernel,
        out_shape=jax.ShapeDtypeStruct((B, C_out, L * V), jnp.float32),
        grid=(B,),
        in_specs=[
            pl.BlockSpec((None, L * C, V), lambda bi: (bi, 0, 0)),
            pl.BlockSpec((n_static, V, V), lambda bi: (0, 0, 0)),
            pl.BlockSpec(nv1.shape, lambda bi: (0, 0)),
            pl.BlockSpec(nv2.shape, lambda bi: (0, 0)),
            pl.BlockSpec((C_out, n_terms * C), lambda bi: (0, 0)),
            pl.BlockSpec((C_out, 1), lambda bi: (0, 0)),
        ],
        out_specs=pl.BlockSpec((None, C_out, L * V), lambda bi: (bi, 0, 0)),
        scratch_shapes=[pltpu.VMEM((n_terms * C, L * V), jnp.float32)],
        compiler_params=pltpu.CompilerParams(
            dimension_semantics=("parallel",)),
    )(x, A, nv1, nv2, w2, b2)

    # (B, C_out, L*V) -> (B, C_out, L, V) -> NCHW (B, C_out, V, L)
    # TODO(synk): F.dropout(p=0.3) omitted — identity under inference semantics.
    return jnp.transpose(out.reshape(B, C_out, L, V), (0, 1, 3, 2))


# --------------------------- pure-JAX reference --------------------------------
def reference_forward(x_nchw, supports, nodevec1, nodevec2, w_conv, b_conv):
    adp = jax.nn.softmax(jnp.maximum(nodevec1 @ nodevec2, 0.0), axis=1)
    new_supports = list(supports) + [adp]
    out = [x_nchw]
    for a in new_supports:
        x1 = jnp.einsum('ncvl,vw->ncwl', x_nchw, a)
        out.append(x1)
        x2 = jnp.einsum('ncvl,vw->ncwl', x1, a)
        out.append(x2)
    h = jnp.concatenate(out, axis=1)
    w = w_conv.reshape(w_conv.shape[0], -1)  # (C_out, C_in)
    y = jnp.einsum('ncvl,oc->novl', h, w) + b_conv.reshape(1, -1, 1, 1)
    return y


if __name__ == "__main__":
    key = jax.random.PRNGKey(0)
    k1, k2, k3, k4, k5, k6 = jax.random.split(key, 6)

    B, C, V, L = 2, 32, 16, 8        # batch, dilation_channels, num_nodes, seq_len
    C_out = 32                       # residual_channels
    support_len, order = 3, 2
    C_in_mlp = (order * support_len + 1) * C  # 224

    x = jax.random.normal(k1, (B, C, V, L), dtype=jnp.float32)

    # synthetic "doubletransition" supports: row-normalized A and A^T
    # (stands in for util.load_adj, which reads a pickle we cannot load here)
    adj = jnp.abs(jax.random.normal(k2, (V, V), dtype=jnp.float32))
    s0 = adj / jnp.sum(adj, axis=1, keepdims=True)
    s1 = adj.T / jnp.sum(adj.T, axis=1, keepdims=True)
    supports = [s0, s1]

    nodevec1 = jax.random.normal(k3, (V, 10), dtype=jnp.float32)
    nodevec2 = jax.random.normal(k4, (10, V), dtype=jnp.float32)

    w_conv = 0.05 * jax.random.normal(k5, (C_out, C_in_mlp, 1, 1), dtype=jnp.float32)
    b_conv = 0.05 * jax.random.normal(k6, (C_out,), dtype=jnp.float32)

    y = gwnet_forward(x, supports, nodevec1, nodevec2, w_conv, b_conv)
    y = jax.block_until_ready(y)

    y_ref = reference_forward(x, supports, nodevec1, nodevec2, w_conv, b_conv)
    assert y.shape == (B, C_out, V, L), y.shape
    assert jnp.allclose(y, y_ref, atol=1e-4, rtol=1e-4), \
        float(jnp.max(jnp.abs(y - y_ref)))
    print("KERNEL_OK")
</pallas_src>

<mosaic_0001>
module attributes {stable_mosaic.version = 11 : i64} {
  func.func @kernel(%arg0: i32, %arg1: memref<1x256x16xf32, #tpu.memory_space<vmem>>, %arg2: memref<2x16x16xf32, #tpu.memory_space<vmem>>, %arg3: memref<16x10xf32, #tpu.memory_space<vmem>>, %arg4: memref<10x16xf32, #tpu.memory_space<vmem>>, %arg5: memref<32x224xf32, #tpu.memory_space<vmem>>, %arg6: memref<32x1xf32, #tpu.memory_space<vmem>>, %arg7: memref<1x32x128xf32, #tpu.memory_space<vmem>>, %arg8: memref<224x128xf32, #tpu.memory_space<vmem>>) attributes {dimension_semantics = [#tpu.dimension_semantics<parallel>], iteration_bounds = array<i64: 2>, scalar_prefetch = 0 : i64, scratch_operands = 1 : i64, tpu.core_type = #tpu.core_type<tc>, window_params = [{transform_indices = @transform_0, window_bounds = array<i64: 1, 256, 16>}, {pipeline_mode = #tpu.pipeline_mode<synchronous>, transform_indices = @transform_1, window_bounds = array<i64: 2, 16, 16>}, {pipeline_mode = #tpu.pipeline_mode<synchronous>, transform_indices = @transform_2, window_bounds = array<i64: 16, 10>}, {pipeline_mode = #tpu.pipeline_mode<synchronous>, transform_indices = @transform_3, window_bounds = array<i64: 10, 16>}, {pipeline_mode = #tpu.pipeline_mode<synchronous>, transform_indices = @transform_4, window_bounds = array<i64: 32, 224>}, {pipeline_mode = #tpu.pipeline_mode<synchronous>, transform_indices = @transform_5, window_bounds = array<i64: 32, 1>}, {transform_indices = @transform_6, window_bounds = array<i64: 1, 32, 128>}]} {
    %c0 = arith.constant 0 : index
    %c0_0 = arith.constant 0 : index
    %0 = vector.load %arg3[%c0, %c0_0] : memref<16x10xf32, #tpu.memory_space<vmem>>, vector<16x10xf32>
    %c0_1 = arith.constant 0 : index
    %c0_2 = arith.constant 0 : index
    %1 = vector.load %arg4[%c0_1, %c0_2] : memref<10x16xf32, #tpu.memory_space<vmem>>, vector<10x16xf32>
    %cst = arith.constant dense<0.000000e+00> : vector<16x16xf32>
    %2 = tpu.matmul %0, %1, %cst {dimension_numbers = #tpu.dot_dimension_numbers<[1], [0], [0], [1], [0, 0, 1, 1], [], []>} : vector<16x10xf32>, vector<10x16xf32>, vector<16x16xf32> -> vector<16x16xf32>
    %cst_3 = arith.constant 0.000000e+00 : f32
    %3 = vector.broadcast %cst_3 : f32 to vector<16x16xf32>
    %4 = arith.maximumf %2, %3 : vector<16x16xf32>
    %cst_4 = arith.constant dense<0xFF800000> : vector<16xf32>
    %5 = vector.multi_reduction <maximumf>, %4, %cst_4 [1] : vector<16x16xf32> to vector<16xf32>
    %6 = vector.shape_cast %5 : vector<16xf32> to vector<16x1xf32>
    %7 = vector.broadcast %6 : vector<16x1xf32> to vector<16x16xf32>
    %8 = arith.subf %4, %7 : vector<16x16xf32>
    %9 = math.exp %8 : vector<16x16xf32>
    %cst_5 = arith.constant dense<0.000000e+00> : vector<16xf32>
    %10 = vector.multi_reduction <add>, %9, %cst_5 [1] : vector<16x16xf32> to vector<16xf32>
    %11 = vector.shape_cast %10 : vector<16xf32> to vector<16x1xf32>
    %12 = vector.broadcast %11 : vector<16x1xf32> to vector<16x16xf32>
    %13 = arith.divf %9, %12 : vector<16x16xf32>
    %c0_6 = arith.constant 0 : index
    %c0_7 = arith.constant 0 : index
    %c0_8 = arith.constant 0 : index
    %14 = vector.load %arg1[%c0_6, %c0_7, %c0_8] : memref<1x256x16xf32, #tpu.memory_space<vmem>>, vector<1x256x16xf32>
    %15 = vector.shape_cast %14 : vector<1x256x16xf32> to vector<256x16xf32>
    %16 = vector.extract_strided_slice %15 {offsets = [0, 0], sizes = [32, 16], strides = [1, 1]} : vector<256x16xf32> to vector<32x16xf32>
    %c0_9 = arith.constant 0 : index
    %c0_10 = arith.constant 0 : index
    %17 = vector.load %arg8[%c0_9, %c0_10] : memref<224x128xf32, #tpu.memory_space<vmem>>, vector<32x16xf32>
    tpu.vector_store %arg8[%c0_9, %c0_10], %16 {strides = array<i32>} : memref<224x128xf32, #tpu.memory_space<vmem>>, vector<32x16xf32>,
    %18 = vector.extract_strided_slice %15 {offsets = [32, 0], sizes = [32, 16], strides = [1, 1]} : vector<256x16xf32> to vector<32x16xf32>
    %c0_11 = arith.constant 0 : index
    %c16 = arith.constant 16 : index
    %19 = vector.load %arg8[%c0_11, %c16] : memref<224x128xf32, #tpu.memory_space<vmem>>, vector<32x16xf32>
    tpu.vector_store %arg8[%c0_11, %c16], %18 {strides = array<i32>} : memref<224x128xf32, #tpu.memory_space<vmem>>, vector<32x16xf32>,
    %20 = vector.extract_strided_slice %15 {offsets = [64, 0], sizes = [32, 16], strides = [1, 1]} : vector<256x16xf32> to vector<32x16xf32>
    %c0_12 = arith.constant 0 : index
    %c32 = arith.constant 32 : index
    %21 = vector.load %arg8[%c0_12, %c32] : memref<224x128xf32, #tpu.memory_space<vmem>>, vector<32x16xf32>
    tpu.vector_store %arg8[%c0_12, %c32], %20 {strides = array<i32>} : memref<224x128xf32, #tpu.memory_space<vmem>>, vector<32x16xf32>,
    %22 = vector.extract_strided_slice %15 {offsets = [96, 0], sizes = [32, 16], strides = [1, 1]} : vector<256x16xf32> to vector<32x16xf32>
    %c0_13 = arith.constant 0 : index
    %c48 = arith.constant 48 : index
    %23 = vector.load %arg8[%c0_13, %c48] : memref<224x128xf32, #tpu.memory_space<vmem>>, vector<32x16xf32>
    tpu.vector_store %arg8[%c0_13, %c48], %22 {strides = array<i32>} : memref<224x128xf32, #tpu.memory_space<vmem>>, vector<32x16xf32>,
    %24 = vector.extract_strided_slice %15 {offsets = [128, 0], sizes = [32, 16], strides = [1, 1]} : vector<256x16xf32> to vector<32x16xf32>
    %c0_14 = arith.constant 0 : index
    %c64 = arith.constant 64 : index
    %25 = vector.load %arg8[%c0_14, %c64] : memref<224x128xf32, #tpu.memory_space<vmem>>, vector<32x16xf32>
    tpu.vector_store %arg8[%c0_14, %c64], %24 {strides = array<i32>} : memref<224x128xf32, #tpu.memory_space<vmem>>, vector<32x16xf32>,
    %26 = vector.extract_strided_slice %15 {offsets = [160, 0], sizes = [32, 16], strides = [1, 1]} : vector<256x16xf32> to vector<32x16xf32>
    %c0_15 = arith.constant 0 : index
    %c80 = arith.constant 80 : index
    %27 = vector.load %arg8[%c0_15, %c80] : memref<224x128xf32, #tpu.memory_space<vmem>>, vector<32x16xf32>
    tpu.vector_store %arg8[%c0_15, %c80], %26 {strides = array<i32>} : memref<224x128xf32, #tpu.memory_space<vmem>>, vector<32x16xf32>,
    %28 = vector.extract_strided_slice %15 {offsets = [192, 0], sizes = [32, 16], strides = [1, 1]} : vector<256x16xf32> to vector<32x16xf32>
    %c0_16 = arith.constant 0 : index
    %c96 = arith.constant 96 : index
    %29 = vector.load %arg8[%c0_16, %c96] : memref<224x128xf32, #tpu.memory_space<vmem>>, vector<32x16xf32>
    tpu.vector_store %arg8[%c0_16, %c96], %28 {strides = array<i32>} : memref<224x128xf32, #tpu.memory_space<vmem>>, vector<32x16xf32>,
    %30 = vector.extract_strided_slice %15 {offsets = [224, 0], sizes = [32, 16], strides = [1, 1]} : vector<256x16xf32> to vector<32x16xf32>
    %c0_17 = arith.constant 0 : index
    %c112 = arith.constant 112 : index
    %31 = vector.load %arg8[%c0_17, %c112] : memref<224x128xf32, #tpu.memory_space<vmem>>, vector<32x16xf32>
    tpu.vector_store %arg8[%c0_17, %c112], %30 {strides = array<i32>} : memref<224x128xf32, #tpu.memory_space<vmem>>, vector<32x16xf32>,
    %c0_18 = arith.constant 0 : index
    %c0_19 = arith.constant 0 : index
    %c0_20 = arith.constant 0 : index
    %32 = vector.load %arg2[%c0_18, %c0_19, %c0_20] : memref<2x16x16xf32, #tpu.memory_space<vmem>>, vector<1x16x16xf32>
    %33 = vector.shape_cast %32 : vector<1x16x16xf32> to vector<16x16xf32>
    %c0_21 = arith.constant 0 : index
    %c0_22 = arith.constant 0 : index
    %c0_23 = arith.constant 0 : index
    %34 = vector.load %arg1[%c0_21, %c0_22, %c0_23] : memref<1x256x16xf32, #tpu.memory_space<vmem>>, vector<1x256x16xf32>
    %35 = vector.shape_cast %34 : vector<1x256x16xf32> to vector<256x16xf32>
    %cst_24 = arith.constant dense<0.000000e+00> : vector<256x16xf32>
    %36 = tpu.matmul %35, %33, %cst_24 {dimension_numbers = #tpu.dot_dimension_numbers<[1], [0], [0], [1], [0, 0, 1, 1], [], []>} : vector<256x16xf32>, vector<16x16xf32>, vector<256x16xf32> -> vector<256x16xf32>
    %37 = vector.extract_strided_slice %36 {offsets = [0, 0], sizes = [32, 16], strides = [1, 1]} : vector<256x16xf32> to vector<32x16xf32>
    %c32_25 = arith.constant 32 : index
    %c0_26 = arith.constant 0 : index
    %38 = vector.load %arg8[%c32_25, %c0_26] : memref<224x128xf32, #tpu.memory_space<vmem>>, vector<32x16xf32>
    tpu.vector_store %arg8[%c32_25, %c0_26], %37 {strides = array<i32>} : memref<224x128xf32, #tpu.memory_space<vmem>>, vector<32x16xf32>,
    %39 = vector.extract_strided_slice %36 {offsets = [32, 0], sizes = [32, 16], strides = [1, 1]} : vector<256x16xf32> to vector<32x16xf32>
    %c32_27 = arith.constant 32 : index
    %c16_28 = arith.constant 16 : index
    %40 = vector.load %arg8[%c32_27, %c16_28] : memref<224x128xf32, #tpu.memory_space<vmem>>, vector<32x16xf32>
    tpu.vector_store %arg8[%c32_27, %c16_28], %39 {strides = array<i32>} : memref<224x128xf32, #tpu.memory_space<vmem>>, vector<32x16xf32>,
    %41 = vector.extract_strided_slice %36 {offsets = [64, 0], sizes = [32, 16], strides = [1, 1]} : vector<256x16xf32> to vector<32x16xf32>
    %c32_29 = arith.constant 32 : index
    %c32_30 = arith.constant 32 : index
    %42 = vector.load %arg8[%c32_29, %c32_30] : memref<224x128xf32, #tpu.memory_space<vmem>>, vector<32x16xf32>
    tpu.vector_store %arg8[%c32_29, %c32_30], %41 {strides = array<i32>} : memref<224x128xf32, #tpu.memory_space<vmem>>, vector<32x16xf32>,
    %43 = vector.extract_strided_slice %36 {offsets = [96, 0], sizes = [32, 16], strides = [1, 1]} : vector<256x16xf32> to vector<32x16xf32>
    %c32_31 = arith.constant 32 : index
    %c48_32 = arith.constant 48 : index
    %44 = vector.load %arg8[%c32_31, %c48_32] : memref<224x128xf32, #tpu.memory_space<vmem>>, vector<32x16xf32>
    tpu.vector_store %arg8[%c32_31, %c48_32], %43 {strides = array<i32>} : memref<224x128xf32, #tpu.memory_space<vmem>>, vector<32x16xf32>,
    %45 = vector.extract_strided_slice %36 {offsets = [128, 0], sizes = [32, 16], strides = [1, 1]} : vector<256x16xf32> to vector<32x16xf32>
    %c32_33 = arith.constant 32 : index
    %c64_34 = arith.constant 64 : index
    %46 = vector.load %arg8[%c32_33, %c64_34] : memref<224x128xf32, #tpu.memory_space<vmem>>, vector<32x16xf32>
    tpu.vector_store %arg8[%c32_33, %c64_34], %45 {strides = array<i32>} : memref<224x128xf32, #tpu.memory_space<vmem>>, vector<32x16xf32>,
    %47 = vector.extract_strided_slice %36 {offsets = [160, 0], sizes = [32, 16], strides = [1, 1]} : vector<256x16xf32> to vector<32x16xf32>
    %c32_35 = arith.constant 32 : index
    %c80_36 = arith.constant 80 : index
    %48 = vector.load %arg8[%c32_35, %c80_36] : memref<224x128xf32, #tpu.memory_space<vmem>>, vector<32x16xf32>
    tpu.vector_store %arg8[%c32_35, %c80_36], %47 {strides = array<i32>} : memref<224x128xf32, #tpu.memory_space<vmem>>, vector<32x16xf32>,
    %49 = vector.extract_strided_slice %36 {offsets = [192, 0], sizes = [32, 16], strides = [1, 1]} : vector<256x16xf32> to vector<32x16xf32>
    %c32_37 = arith.constant 32 : index
    %c96_38 = arith.constant 96 : index
    %50 = vector.load %arg8[%c32_37, %c96_38] : memref<224x128xf32, #tpu.memory_space<vmem>>, vector<32x16xf32>
    tpu.vector_store %arg8[%c32_37, %c96_38], %49 {strides = array<i32>} : memref<224x128xf32, #tpu.memory_space<vmem>>, vector<32x16xf32>,
    %51 = vector.extract_strided_slice %36 {offsets = [224, 0], sizes = [32, 16], strides = [1, 1]} : vector<256x16xf32> to vector<32x16xf32>
    %c32_39 = arith.constant 32 : index
    %c112_40 = arith.constant 112 : index
    %52 = vector.load %arg8[%c32_39, %c112_40] : memref<224x128xf32, #tpu.memory_space<vmem>>, vector<32x16xf32>
    tpu.vector_store %arg8[%c32_39, %c112_40], %51 {strides = array<i32>} : memref<224x128xf32, #tpu.memory_space<vmem>>, vector<32x16xf32>,
    %cst_41 = arith.constant dense<0.000000e+00> : vector<256x16xf32>
    %53 = tpu.matmul %36, %33, %cst_41 {dimension_numbers = #tpu.dot_dimension_numbers<[1], [0], [0], [1], [0, 0, 1, 1], [], []>} : vector<256x16xf32>, vector<16x16xf32>, vector<256x16xf32> -> vector<256x16xf32>
    %54 = vector.extract_strided_slice %53 {offsets = [0, 0], sizes = [32, 16], strides = [1, 1]} : vector<256x16xf32> to vector<32x16xf32>
    %c64_42 = arith.constant 64 : index
    %c0_43 = arith.constant 0 : index
    %55 = vector.load %arg8[%c64_42, %c0_43] : memref<224x128xf32, #tpu.memory_space<vmem>>, vector<32x16xf32>
    tpu.vector_store %arg8[%c64_42, %c0_43], %54 {strides = array<i32>} : memref<224x128xf32, #tpu.memory_space<vmem>>, vector<32x16xf32>,
    %56 = vector.extract_strided_slice %53 {offsets = [32, 0], sizes = [32, 16], strides = [1, 1]} : vector<256x16xf32> to vector<32x16xf32>
    %c64_44 = arith.constant 64 : index
    %c16_45 = arith.constant 16 : index
    %57 = vector.load %arg8[%c64_44, %c16_45] : memref<224x128xf32, #tpu.memory_space<vmem>>, vector<32x16xf32>
    tpu.vector_store %arg8[%c64_44, %c16_45], %56 {strides = array<i32>} : memref<224x128xf32, #tpu.memory_space<vmem>>, vector<32x16xf32>,
    %58 = vector.extract_strided_slice %53 {offsets = [64, 0], sizes = [32, 16], strides = [1, 1]} : vector<256x16xf32> to vector<32x16xf32>
    %c64_46 = arith.constant 64 : index
    %c32_47 = arith.constant 32 : index
    %59 = vector.load %arg8[%c64_46, %c32_47] : memref<224x128xf32, #tpu.memory_space<vmem>>, vector<32x16xf32>
    tpu.vector_store %arg8[%c64_46, %c32_47], %58 {strides = array<i32>} : memref<224x128xf32, #tpu.memory_space<vmem>>, vector<32x16xf32>,
    %60 = vector.extract_strided_slice %53 {offsets = [96, 0], sizes = [32, 16], strides = [1, 1]} : vector<256x16xf32> to vector<32x16xf32>
    %c64_48 = arith.constant 64 : index
    %c48_49 = arith.constant 48 : index
    %61 = vector.load %arg8[%c64_48, %c48_49] : memref<224x128xf32, #tpu.memory_space<vmem>>, vector<32x16xf32>
    tpu.vector_store %arg8[%c64_48, %c48_49], %60 {strides = array<i32>} : memref<224x128xf32, #tpu.memory_space<vmem>>, vector<32x16xf32>,
    %62 = vector.extract_strided_slice %53 {offsets = [128, 0], sizes = [32, 16], strides = [1, 1]} : vector<256x16xf32> to vector<32x16xf32>
    %c64_50 = arith.constant 64 : index
    %c64_51 = arith.constant 64 : index
    %63 = vector.load %arg8[%c64_50, %c64_51] : memref<224x128xf32, #tpu.memory_space<vmem>>, vector<32x16xf32>
    tpu.vector_store %arg8[%c64_50, %c64_51], %62 {strides = array<i32>} : memref<224x128xf32, #tpu.memory_space<vmem>>, vector<32x16xf32>,
    %64 = vector.extract_strided_slice %53 {offsets = [160, 0], sizes = [32, 16], strides = [1, 1]} : vector<256x16xf32> to vector<32x16xf32>
    %c64_52 = arith.constant 64 : index
    %c80_53 = arith.constant 80 : index
    %65 = vector.load %arg8[%c64_52, %c80_53] : memref<224x128xf32, #tpu.memory_space<vmem>>, vector<32x16xf32>
    tpu.vector_store %arg8[%c64_52, %c80_53], %64 {strides = array<i32>} : memref<224x128xf32, #tpu.memory_space<vmem>>, vector<32x16xf32>,
    %66 = vector.extract_strided_slice %53 {offsets = [192, 0], sizes = [32, 16], strides = [1, 1]} : vector<256x16xf32> to vector<32x16xf32>
    %c64_54 = arith.constant 64 : index
    %c96_55 = arith.constant 96 : index
    %67 = vector.load %arg8[%c64_54, %c96_55] : memref<224x128xf32, #tpu.memory_space<vmem>>, vector<32x16xf32>
    tpu.vector_store %arg8[%c64_54, %c96_55], %66 {strides = array<i32>} : memref<224x128xf32, #tpu.memory_space<vmem>>, vector<32x16xf32>,
    %68 = vector.extract_strided_slice %53 {offsets = [224, 0], sizes = [32, 16], strides = [1, 1]} : vector<256x16xf32> to vector<32x16xf32>
    %c64_56 = arith.constant 64 : index
    %c112_57 = arith.constant 112 : index
    %69 = vector.load %arg8[%c64_56, %c112_57] : memref<224x128xf32, #tpu.memory_space<vmem>>, vector<32x16xf32>
    tpu.vector_store %arg8[%c64_56, %c112_57], %68 {strides = array<i32>} : memref<224x128xf32, #tpu.memory_space<vmem>>, vector<32x16xf32>,
    %c1 = arith.constant 1 : index
    %c0_58 = arith.constant 0 : index
    %c0_59 = arith.constant 0 : index
    %70 = vector.load %arg2[%c1, %c0_58, %c0_59] : memref<2x16x16xf32, #tpu.memory_space<vmem>>, vector<1x16x16xf32>
    %71 = vector.shape_cast %70 : vector<1x16x16xf32> to vector<16x16xf32>
    %c0_60 = arith.constant 0 : index
    %c0_61 = arith.constant 0 : index
    %c0_62 = arith.constant 0 : index
    %72 = vector.load %arg1[%c0_60, %c0_61, %c0_62] : memref<1x256x16xf32, #tpu.memory_space<vmem>>, vector<1x256x16xf32>
    %73 = vector.shape_cast %72 : vector<1x256x16xf32> to vector<256x16xf32>
    %cst_63 = arith.constant dense<0.000000e+00> : vector<256x16xf32>
    %74 = tpu.matmul %73, %71, %cst_63 {dimension_numbers = #tpu.dot_dimension_numbers<[1], [0], [0], [1], [0, 0, 1, 1], [], []>} : vector<256x16xf32>, vector<16x16xf32>, vector<256x16xf32> -> vector<256x16xf32>
    %75 = vector.extract_strided_slice %74 {offsets = [0, 0], sizes = [32, 16], strides = [1, 1]} : vector<256x16xf32> to vector<32x16xf32>
    %c96_64 = arith.constant 96 : index
    %c0_65 = arith.constant 0 : index
    %76 = vector.load %arg8[%c96_64, %c0_65] : memref<224x128xf32, #tpu.memory_space<vmem>>, vector<32x16xf32>
    tpu.vector_store %arg8[%c96_64, %c0_65], %75 {strides = array<i32>} : memref<224x128xf32, #tpu.memory_space<vmem>>, vector<32x16xf32>,
    %77 = vector.extract_strided_slice %74 {offsets = [32, 0], sizes = [32, 16], strides = [1, 1]} : vector<256x16xf32> to vector<32x16xf32>
    %c96_66 = arith.constant 96 : index
    %c16_67 = arith.constant 16 : index
    %78 = vector.load %arg8[%c96_66, %c16_67] : memref<224x128xf32, #tpu.memory_space<vmem>>, vector<32x16xf32>
    tpu.vector_store %arg8[%c96_66, %c16_67], %77 {strides = array<i32>} : memref<224x128xf32, #tpu.memory_space<vmem>>, vector<32x16xf32>,
    %79 = vector.extract_strided_slice %74 {offsets = [64, 0], sizes = [32, 16], strides = [1, 1]} : vector<256x16xf32> to vector<32x16xf32>
    %c96_68 = arith.constant 96 : index
    %c32_69 = arith.constant 32 : index
    %80 = vector.load %arg8[%c96_68, %c32_69] : memref<224x128xf32, #tpu.memory_space<vmem>>, vector<32x16xf32>
    tpu.vector_store %arg8[%c96_68, %c32_69], %79 {strides = array<i32>} : memref<224x128xf32, #tpu.memory_space<vmem>>, vector<32x16xf32>,
    %81 = vector.extract_strided_slice %74 {offsets = [96, 0], sizes = [32, 16], strides = [1, 1]} : vector<256x16xf32> to vector<32x16xf32>
    %c96_70 = arith.constant 96 : index
    %c48_71 = arith.constant 48 : index
    %82 = vector.load %arg8[%c96_70, %c48_71] : memref<224x128xf32, #tpu.memory_space<vmem>>, vector<32x16xf32>
    tpu.vector_store %arg8[%c96_70, %c48_71], %81 {strides = array<i32>} : memref<224x128xf32, #tpu.memory_space<vmem>>, vector<32x16xf32>,
    %83 = vector.extract_strided_slice %74 {offsets = [128, 0], sizes = [32, 16], strides = [1, 1]} : vector<256x16xf32> to vector<32x16xf32>
    %c96_72 = arith.constant 96 : index
    %c64_73 = arith.constant 64 : index
    %84 = vector.load %arg8[%c96_72, %c64_73] : memref<224x128xf32, #tpu.memory_space<vmem>>, vector<32x16xf32>
    tpu.vector_store %arg8[%c96_72, %c64_73], %83 {strides = array<i32>} : memref<224x128xf32, #tpu.memory_space<vmem>>, vector<32x16xf32>,
    %85 = vector.extract_strided_slice %74 {offsets = [160, 0], sizes = [32, 16], strides = [1, 1]} : vector<256x16xf32> to vector<32x16xf32>
    %c96_74 = arith.constant 96 : index
    %c80_75 = arith.constant 80 : index
    %86 = vector.load %arg8[%c96_74, %c80_75] : memref<224x128xf32, #tpu.memory_space<vmem>>, vector<32x16xf32>
    tpu.vector_store %arg8[%c96_74, %c80_75], %85 {strides = array<i32>} : memref<224x128xf32, #tpu.memory_space<vmem>>, vector<32x16xf32>,
    %87 = vector.extract_strided_slice %74 {offsets = [192, 0], sizes = [32, 16], strides = [1, 1]} : vector<256x16xf32> to vector<32x16xf32>
    %c96_76 = arith.constant 96 : index
    %c96_77 = arith.constant 96 : index
    %88 = vector.load %arg8[%c96_76, %c96_77] : memref<224x128xf32, #tpu.memory_space<vmem>>, vector<32x16xf32>
    tpu.vector_store %arg8[%c96_76, %c96_77], %87 {strides = array<i32>} : memref<224x128xf32, #tpu.memory_space<vmem>>, vector<32x16xf32>,
    %89 = vector.extract_strided_slice %74 {offsets = [224, 0], sizes = [32, 16], strides = [1, 1]} : vector<256x16xf32> to vector<32x16xf32>
    %c96_78 = arith.constant 96 : index
    %c112_79 = arith.constant 112 : index
    %90 = vector.load %arg8[%c96_78, %c112_79] : memref<224x128xf32, #tpu.memory_space<vmem>>, vector<32x16xf32>
    tpu.vector_store %arg8[%c96_78, %c112_79], %89 {strides = array<i32>} : memref<224x128xf32, #tpu.memory_space<vmem>>, vector<32x16xf32>,
    %cst_80 = arith.constant dense<0.000000e+00> : vector<256x16xf32>
    %91 = tpu.matmul %74, %71, %cst_80 {dimension_numbers = #tpu.dot_dimension_numbers<[1], [0], [0], [1], [0, 0, 1, 1], [], []>} : vector<256x16xf32>, vector<16x16xf32>, vector<256x16xf32> -> vector<256x16xf32>
    %92 = vector.extract_strided_slice %91 {offsets = [0, 0], sizes = [32, 16], strides = [1, 1]} : vector<256x16xf32> to vector<32x16xf32>
    %c128 = arith.constant 128 : index
    %c0_81 = arith.constant 0 : index
    %93 = vector.load %arg8[%c128, %c0_81] : memref<224x128xf32, #tpu.memory_space<vmem>>, vector<32x16xf32>
    tpu.vector_store %arg8[%c128, %c0_81], %92 {strides = array<i32>} : memref<224x128xf32, #tpu.memory_space<vmem>>, vector<32x16xf32>,
    %94 = vector.extract_strided_slice %91 {offsets = [32, 0], sizes = [32, 16], strides = [1, 1]} : vector<256x16xf32> to vector<32x16xf32>
    %c128_82 = arith.constant 128 : index
    %c16_83 = arith.constant 16 : index
    %95 = vector.load %arg8[%c128_82, %c16_83] : memref<224x128xf32, #tpu.memory_space<vmem>>, vector<32x16xf32>
    tpu.vector_store %arg8[%c128_82, %c16_83], %94 {strides = array<i32>} : memref<224x128xf32, #tpu.memory_space<vmem>>, vector<32x16xf32>,
    %96 = vector.extract_strided_slice %91 {offsets = [64, 0], sizes = [32, 16], strides = [1, 1]} : vector<256x16xf32> to vector<32x16xf32>
    %c128_84 = arith.constant 128 : index
    %c32_85 = arith.constant 32 : index
    %97 = vector.load %arg8[%c128_84, %c32_85] : memref<224x128xf32, #tpu.memory_space<vmem>>, vector<32x16xf32>
    tpu.vector_store %arg8[%c128_84, %c32_85], %96 {strides = array<i32>} : memref<224x128xf32, #tpu.memory_space<vmem>>, vector<32x16xf32>,
    %98 = vector.extract_strided_slice %91 {offsets = [96, 0], sizes = [32, 16], strides = [1, 1]} : vector<256x16xf32> to vector<32x16xf32>
    %c128_86 = arith.constant 128 : index
    %c48_87 = arith.constant 48 : index
    %99 = vector.load %arg8[%c128_86, %c48_87] : memref<224x128xf32, #tpu.memory_space<vmem>>, vector<32x16xf32>
    tpu.vector_store %arg8[%c128_86, %c48_87], %98 {strides = array<i32>} : memref<224x128xf32, #tpu.memory_space<vmem>>, vector<32x16xf32>,
    %100 = vector.extract_strided_slice %91 {offsets = [128, 0], sizes = [32, 16], strides = [1, 1]} : vector<256x16xf32> to vector<32x16xf32>
    %c128_88 = arith.constant 128 : index
    %c64_89 = arith.constant 64 : index
    %101 = vector.load %arg8[%c128_88, %c64_89] : memref<224x128xf32, #tpu.memory_space<vmem>>, vector<32x16xf32>
    tpu.vector_store %arg8[%c128_88, %c64_89], %100 {strides = array<i32>} : memref<224x128xf32, #tpu.memory_space<vmem>>, vector<32x16xf32>,
    %102 = vector.extract_strided_slice %91 {offsets = [160, 0], sizes = [32, 16], strides = [1, 1]} : vector<256x16xf32> to vector<32x16xf32>
    %c128_90 = arith.constant 128 : index
    %c80_91 = arith.constant 80 : index
    %103 = vector.load %arg8[%c128_90, %c80_91] : memref<224x128xf32, #tpu.memory_space<vmem>>, vector<32x16xf32>
    tpu.vector_store %arg8[%c128_90, %c80_91], %102 {strides = array<i32>} : memref<224x128xf32, #tpu.memory_space<vmem>>, vector<32x16xf32>,
    %104 = vector.extract_strided_slice %91 {offsets = [192, 0], sizes = [32, 16], strides = [1, 1]} : vector<256x16xf32> to vector<32x16xf32>
    %c128_92 = arith.constant 128 : index
    %c96_93 = arith.constant 96 : index
    %105 = vector.load %arg8[%c128_92, %c96_93] : memref<224x128xf32, #tpu.memory_space<vmem>>, vector<32x16xf32>
    tpu.vector_store %arg8[%c128_92, %c96_93], %104 {strides = array<i32>} : memref<224x128xf32, #tpu.memory_space<vmem>>, vector<32x16xf32>,
    %106 = vector.extract_strided_slice %91 {offsets = [224, 0], sizes = [32, 16], strides = [1, 1]} : vector<256x16xf32> to vector<32x16xf32>
    %c128_94 = arith.constant 128 : index
    %c112_95 = arith.constant 112 : index
    %107 = vector.load %arg8[%c128_94, %c112_95] : memref<224x128xf32, #tpu.memory_space<vmem>>, vector<32x16xf32>
    tpu.vector_store %arg8[%c128_94, %c112_95], %106 {strides = array<i32>} : memref<224x128xf32, #tpu.memory_space<vmem>>, vector<32x16xf32>,
    %c0_96 = arith.constant 0 : index
    %c0_97 = arith.constant 0 : index
    %c0_98 = arith.constant 0 : index
    %108 = vector.load %arg1[%c0_96, %c0_97, %c0_98] : memref<1x256x16xf32, #tpu.memory_space<vmem>>, vector<1x256x16xf32>
    %109 = vector.shape_cast %108 : vector<1x256x16xf32> to vector<256x16xf32>
    %cst_99 = arith.constant dense<0.000000e+00> : vector<256x16xf32>
    %110 = tpu.matmul %109, %13, %cst_99 {dimension_numbers = #tpu.dot_dimension_numbers<[1], [0], [0], [1], [0, 0, 1, 1], [], []>} : vector<256x16xf32>, vector<16x16xf32>, vector<256x16xf32> -> vector<256x16xf32>
    %111 = vector.extract_strided_slice %110 {offsets = [0, 0], sizes = [32, 16], strides = [1, 1]} : vector<256x16xf32> to vector<32x16xf32>
    %c160 = arith.constant 160 : index
    %c0_100 = arith.constant 0 : index
    %112 = vector.load %arg8[%c160, %c0_100] : memref<224x128xf32, #tpu.memory_space<vmem>>, vector<32x16xf32>
    tpu.vector_store %arg8[%c160, %c0_100], %111 {strides = array<i32>} : memref<224x128xf32, #tpu.memory_space<vmem>>, vector<32x16xf32>,
    %113 = vector.extract_strided_slice %110 {offsets = [32, 0], sizes = [32, 16], strides = [1, 1]} : vector<256x16xf32> to vector<32x16xf32>
    %c160_101 = arith.constant 160 : index
    %c16_102 = arith.constant 16 : index
    %114 = vector.load %arg8[%c160_101, %c16_102] : memref<224x128xf32, #tpu.memory_space<vmem>>, vector<32x16xf32>
    tpu.vector_store %arg8[%c160_101, %c16_102], %113 {strides = array<i32>} : memref<224x128xf32, #tpu.memory_space<vmem>>, vector<32x16xf32>,
    %115 = vector.extract_strided_slice %110 {offsets = [64, 0], sizes = [32, 16], strides = [1, 1]} : vector<256x16xf32> to vector<32x16xf32>
    %c160_103 = arith.constant 160 : index
    %c32_104 = arith.constant 32 : index
    %116 = vector.load %arg8[%c160_103, %c32_104] : memref<224x128xf32, #tpu.memory_space<vmem>>, vector<32x16xf32>
    tpu.vector_store %arg8[%c160_103, %c32_104], %115 {strides = array<i32>} : memref<224x128xf32, #tpu.memory_space<vmem>>, vector<32x16xf32>,
    %117 = vector.extract_strided_slice %110 {offsets = [96, 0], sizes = [32, 16], strides = [1, 1]} : vector<256x16xf32> to vector<32x16xf32>
    %c160_105 = arith.constant 160 : index
    %c48_106 = arith.constant 48 : index
    %118 = vector.load %arg8[%c160_105, %c48_106] : memref<224x128xf32, #tpu.memory_space<vmem>>, vector<32x16xf32>
    tpu.vector_store %arg8[%c160_105, %c48_106], %117 {strides = array<i32>} : memref<224x128xf32, #tpu.memory_space<vmem>>, vector<32x16xf32>,
    %119 = vector.extract_strided_slice %110 {offsets = [128, 0], sizes = [32, 16], strides = [1, 1]} : vector<256x16xf32> to vector<32x16xf32>
    %c160_107 = arith.constant 160 : index
    %c64_108 = arith.constant 64 : index
    %120 = vector.load %arg8[%c160_107, %c64_108] : memref<224x128xf32, #tpu.memory_space<vmem>>, vector<32x16xf32>
    tpu.vector_store %arg8[%c160_107, %c64_108], %119 {strides = array<i32>} : memref<224x128xf32, #tpu.memory_space<vmem>>, vector<32x16xf32>,
    %121 = vector.extract_strided_slice %110 {offsets = [160, 0], sizes = [32, 16], strides = [1, 1]} : vector<256x16xf32> to vector<32x16xf32>
    %c160_109 = arith.constant 160 : index
    %c80_110 = arith.constant 80 : index
    %122 = vector.load %arg8[%c160_109, %c80_110] : memref<224x128xf32, #tpu.memory_space<vmem>>, vector<32x16xf32>
    tpu.vector_store %arg8[%c160_109, %c80_110], %121 {strides = array<i32>} : memref<224x128xf32, #tpu.memory_space<vmem>>, vector<32x16xf32>,
    %123 = vector.extract_strided_slice %110 {offsets = [192, 0], sizes = [32, 16], strides = [1, 1]} : vector<256x16xf32> to vector<32x16xf32>
    %c160_111 = arith.constant 160 : index
    %c96_112 = arith.constant 96 : index
    %124 = vector.load %arg8[%c160_111, %c96_112] : memref<224x128xf32, #tpu.memory_space<vmem>>, vector<32x16xf32>
    tpu.vector_store %arg8[%c160_111, %c96_112], %123 {strides = array<i32>} : memref<224x128xf32, #tpu.memory_space<vmem>>, vector<32x16xf32>,
    %125 = vector.extract_strided_slice %110 {offsets = [224, 0], sizes = [32, 16], strides = [1, 1]} : vector<256x16xf32> to vector<32x16xf32>
    %c160_113 = arith.constant 160 : index
    %c112_114 = arith.constant 112 : index
    %126 = vector.load %arg8[%c160_113, %c112_114] : memref<224x128xf32, #tpu.memory_space<vmem>>, vector<32x16xf32>
    tpu.vector_store %arg8[%c160_113, %c112_114], %125 {strides = array<i32>} : memref<224x128xf32, #tpu.memory_space<vmem>>, vector<32x16xf32>,
    %cst_115 = arith.constant dense<0.000000e+00> : vector<256x16xf32>
    %127 = tpu.matmul %110, %13, %cst_115 {dimension_numbers = #tpu.dot_dimension_numbers<[1], [0], [0], [1], [0, 0, 1, 1], [], []>} : vector<256x16xf32>, vector<16x16xf32>, vector<256x16xf32> -> vector<256x16xf32>
    %128 = vector.extract_strided_slice %127 {offsets = [0, 0], sizes = [32, 16], strides = [1, 1]} : vector<256x16xf32> to vector<32x16xf32>
    %c192 = arith.constant 192 : index
    %c0_116 = arith.constant 0 : index
    %129 = vector.load %arg8[%c192, %c0_116] : memref<224x128xf32, #tpu.memory_space<vmem>>, vector<32x16xf32>
    tpu.vector_store %arg8[%c192, %c0_116], %128 {strides = array<i32>} : memref<224x128xf32, #tpu.memory_space<vmem>>, vector<32x16xf32>,
    %130 = vector.extract_strided_slice %127 {offsets = [32, 0], sizes = [32, 16], strides = [1, 1]} : vector<256x16xf32> to vector<32x16xf32>
    %c192_117 = arith.constant 192 : index
    %c16_118 = arith.constant 16 : index
    %131 = vector.load %arg8[%c192_117, %c16_118] : memref<224x128xf32, #tpu.memory_space<vmem>>, vector<32x16xf32>
    tpu.vector_store %arg8[%c192_117, %c16_118], %130 {strides = array<i32>} : memref<224x128xf32, #tpu.memory_space<vmem>>, vector<32x16xf32>,
    %132 = vector.extract_strided_slice %127 {offsets = [64, 0], sizes = [32, 16], strides = [1, 1]} : vector<256x16xf32> to vector<32x16xf32>
    %c192_119 = arith.constant 192 : index
    %c32_120 = arith.constant 32 : index
    %133 = vector.load %arg8[%c192_119, %c32_120] : memref<224x128xf32, #tpu.memory_space<vmem>>, vector<32x16xf32>
    tpu.vector_store %arg8[%c192_119, %c32_120], %132 {strides = array<i32>} : memref<224x128xf32, #tpu.memory_space<vmem>>, vector<32x16xf32>,
    %134 = vector.extract_strided_slice %127 {offsets = [96, 0], sizes = [32, 16], strides = [1, 1]} : vector<256x16xf32> to vector<32x16xf32>
    %c192_121 = arith.constant 192 : index
    %c48_122 = arith.constant 48 : index
    %135 = vector.load %arg8[%c192_121, %c48_122] : memref<224x128xf32, #tpu.memory_space<vmem>>, vector<32x16xf32>
    tpu.vector_store %arg8[%c192_121, %c48_122], %134 {strides = array<i32>} : memref<224x128xf32, #tpu.memory_space<vmem>>, vector<32x16xf32>,
    %136 = vector.extract_strided_slice %127 {offsets = [128, 0], sizes = [32, 16], strides = [1, 1]} : vector<256x16xf32> to vector<32x16xf32>
    %c192_123 = arith.constant 192 : index
    %c64_124 = arith.constant 64 : index
    %137 = vector.load %arg8[%c192_123, %c64_124] : memref<224x128xf32, #tpu.memory_space<vmem>>, vector<32x16xf32>
    tpu.vector_store %arg8[%c192_123, %c64_124], %136 {strides = array<i32>} : memref<224x128xf32, #tpu.memory_space<vmem>>, vector<32x16xf32>,
    %138 = vector.extract_strided_slice %127 {offsets = [160, 0], sizes = [32, 16], strides = [1, 1]} : vector<256x16xf32> to vector<32x16xf32>
    %c192_125 = arith.constant 192 : index
    %c80_126 = arith.constant 80 : index
    %139 = vector.load %arg8[%c192_125, %c80_126] : memref<224x128xf32, #tpu.memory_space<vmem>>, vector<32x16xf32>
    tpu.vector_store %arg8[%c192_125, %c80_126], %138 {strides = array<i32>} : memref<224x128xf32, #tpu.memory_space<vmem>>, vector<32x16xf32>,
    %140 = vector.extract_strided_slice %127 {offsets = [192, 0], sizes = [32, 16], strides = [1, 1]} : vector<256x16xf32> to vector<32x16xf32>
    %c192_127 = arith.constant 192 : index
    %c96_128 = arith.constant 96 : index
    %141 = vector.load %arg8[%c192_127, %c96_128] : memref<224x128xf32, #tpu.memory_space<vmem>>, vector<32x16xf32>
    tpu.vector_store %arg8[%c192_127, %c96_128], %140 {strides = array<i32>} : memref<224x128xf32, #tpu.memory_space<vmem>>, vector<32x16xf32>,
    %142 = vector.extract_strided_slice %127 {offsets = [224, 0], sizes = [32, 16], strides = [1, 1]} : vector<256x16xf32> to vector<32x16xf32>
    %c192_129 = arith.constant 192 : index
    %c112_130 = arith.constant 112 : index
    %143 = vector.load %arg8[%c192_129, %c112_130] : memref<224x128xf32, #tpu.memory_space<vmem>>, vector<32x16xf32>
    tpu.vector_store %arg8[%c192_129, %c112_130], %142 {strides = array<i32>} : memref<224x128xf32, #tpu.memory_space<vmem>>, vector<32x16xf32>,
    %c0_131 = arith.constant 0 : index
    %c0_132 = arith.constant 0 : index
    %144 = vector.load %arg5[%c0_131, %c0_132] : memref<32x224xf32, #tpu.memory_space<vmem>>, vector<32x224xf32>
    %c0_133 = arith.constant 0 : index
    %c0_134 = arith.constant 0 : index
    %145 = vector.load %arg8[%c0_133, %c0_134] : memref<224x128xf32, #tpu.memory_space<vmem>>, vector<224x128xf32>
    %cst_135 = arith.constant dense<0.000000e+00> : vector<32x128xf32>
    %146 = tpu.matmul %144, %145, %cst_135 {dimension_numbers = #tpu.dot_dimension_numbers<[1], [0], [0], [1], [0, 0, 1, 1], [], []>} : vector<32x224xf32>, vector<224x128xf32>, vector<32x128xf32> -> vector<32x128xf32>
    %c0_136 = arith.constant 0 : index
    %c0_137 = arith.constant 0 : index
    %147 = vector.load %arg6[%c0_136, %c0_137] : memref<32x1xf32, #tpu.memory_space<vmem>>, vector<32x1xf32>
    %148 = vector.broadcast %147 : vector<32x1xf32> to vector<32x128xf32>
    %149 = arith.addf %146, %148 : vector<32x128xf32>
    %c0_138 = arith.constant 0 : index
    %c0_139 = arith.constant 0 : index
    %c0_140 = arith.constant 0 : index
    %150 = vector.load %arg7[%c0_138, %c0_139, %c0_140] : memref<1x32x128xf32, #tpu.memory_space<vmem>>, vector<1x32x128xf32>
    %151 = vector.shape_cast %150 : vector<1x32x128xf32> to vector<32x128xf32>
    %152 = vector.shape_cast %149 : vector<32x128xf32> to vector<1x32x128xf32>
    tpu.vector_store %arg7[%c0_138, %c0_139, %c0_140], %152 {strides = array<i32>} : memref<1x32x128xf32, #tpu.memory_space<vmem>>, vector<1x32x128xf32>,
    return
  }
  func.func @transform_0(%arg0: i32) -> (i32, i32, i32) {
    %c0_i32 = arith.constant 0 : i32
    %c0_i32_0 = arith.constant 0 : i32
    %c0_i32_1 = arith.constant 0 : i32
    return %arg0, %c0_i32, %c0_i32_0 : i32, i32, i32
  }
  func.func @transform_1(%arg0: i32) -> (i32, i32, i32) {
    %c0_i32 = arith.constant 0 : i32
    %c0_i32_0 = arith.constant 0 : i32
    %c0_i32_1 = arith.constant 0 : i32
    %c0_i32_2 = arith.constant 0 : i32
    return %c0_i32, %c0_i32_0, %c0_i32_1 : i32, i32, i32
  }
  func.func @transform_2(%arg0: i32) -> (i32, i32) {
    %c0_i32 = arith.constant 0 : i32
    %c0_i32_0 = arith.constant 0 : i32
    %c0_i32_1 = arith.constant 0 : i32
    return %c0_i32, %c0_i32_0 : i32, i32
  }
  func.func @transform_3(%arg0: i32) -> (i32, i32) {
    %c0_i32 = arith.constant 0 : i32
    %c0_i32_0 = arith.constant 0 : i32
    %c0_i32_1 = arith.constant 0 : i32
    return %c0_i32, %c0_i32_0 : i32, i32
  }
  func.func @transform_4(%arg0: i32) -> (i32, i32) {
    %c0_i32 = arith.constant 0 : i32
    %c0_i32_0 = arith.constant 0 : i32
    %c0_i32_1 = arith.constant 0 : i32
    return %c0_i32, %c0_i32_0 : i32, i32
  }
  func.func @transform_5(%arg0: i32) -> (i32, i32) {
    %c0_i32 = arith.constant 0 : i32
    %c0_i32_0 = arith.constant 0 : i32
    %c0_i32_1 = arith.constant 0 : i32
    return %c0_i32, %c0_i32_0 : i32, i32
  }
  func.func @transform_6(%arg0: i32) -> (i32, i32, i32) {
    %c0_i32 = arith.constant 0 : i32
    %c0_i32_0 = arith.constant 0 : i32
    %c0_i32_1 = arith.constant 0 : i32
    return %arg0, %c0_i32, %c0_i32_0 : i32, i32, i32
  }
}

</mosaic_0001>

<bundles_post_ra>
// kernel: tpu_custom_call.1
= control target key start
LH: loop header
LB: loop body
LE: loop exit
PB: predicated region body
PF: predicated region fallthrough
CT: control target
= control target key end

     0   :  { %11 = vsyncpa [#allocation4], 0  ;;  %s5979_s0 = inlined_call_operand.vmem [shape: f32[2,256,16], index: 0, kind: input, shape index: {}]   ;;  %s5980_s1 = inlined_call_operand.vmem [shape: f32[2,16,16], index: 1, kind: input, shape index: {}]   ;;  %s5981_s2 = inlined_call_operand.vmem [shape: f32[16,10], index: 2, kind: input, shape index: {}]   ;;  %s5982_s3 = inlined_call_operand.vmem [shape: f32[10,16], index: 3, kind: input, shape index: {}]   ;;  %s5983_s4 = inlined_call_operand.vmem [shape: f32[32,224], index: 4, kind: input, shape index: {}]   ;;  %s5984_s5 = inlined_call_operand.vmem [shape: f32[32,1], index: 5, kind: input, shape index: {}]   ;;  %s5985_s6 = inlined_call_operand.hbm [shape: f32[2,32,128], index: 6, kind: output, shape index: {}]  }
   0x1   :  { %13 = vsyncpa [#allocation4 + $0x1], 0  ;;  %s4587_s21 = smov 0   ;;  %s4589_s22 = smov 0  }
   0x2   :  { %s4591_s23 = smov 0   ;;  %s4593_s24 = smov 0  }
   0x3 LB: > { %s4608_s25 = sadd.s32 4294967295, %s4537_s24   ;;  %s3593_s26 = sadd.s32 4294967294, %s4537_s24   ;;  %s4537_s24 = sphi %s4593_s24, %s6058_s24   ;;  %s4533_s23 = sphi %s4591_s23, %s6057_s23   ;;  %s4529_s22 = sphi %s4589_s22, %s6056_s22   ;;  %s4525_s21 = sphi %s4587_s21, %s6055_s21  }
   0x4   : > { %s4612_s27 = sadd.s32 1, %s4537_s24   ;;  %s157_s28 = sadd.s32 1, %s4533_s23 }
   0x5   : > { %s154_s29 = ssub.s32 %s4537_s24, %s4612_s27  ;;  %p167_p0 = scmp.ne.s32.totalorder %s4533_s23, %s4529_s22 }
   0x6   : > { %p155_p1 = scmp.eq.s32.totalorder %s154_s29, 0  ;;  %p168_p2 = scmp.eq.s32.totalorder %s4608_s25, 1 }
   0x7   : > { %p173_p3 = scmp.ne.s32.totalorder %s4529_s22, %s4525_s21  ;;  %p174_p4 = scmp.eq.s32.totalorder %s3593_s26, 1 }
   0x8   : > { %s4623_s30 = scalar_select %p155_p1, %s4533_s23, %s157_s28  }
   0x9   : > { %p4625_p5 = por %p168_p2, %p167_p0  ;;  %p4629_p6 = por %p174_p4, %p173_p3 }
   0xa   : > { %p3596_p7 = scmp.ge.s32.totalorder %s4537_s24, 1  ;;  %p215_p8 = scmp.lt.s32.totalorder %s4537_s24, 3 }
   0xc   : > { %p216_p9 = pnand %p3596_p7, %p215_p8 }
   0xe   : > { %219 = sbr.rel (%p216_p9) target bundleno = 1423 (0x58f), region = 44 }
  0x15   : > { %v252_v0 = vld [vmem:[%s5982_s3] sm:$0xff]  ;;  %v253_v1 = vld [vmem:[%s5982_s3 + $0x8] sm:$0x3]  ;;  %vm261_vm0 = vcmask 1041408   ;;  %vm4539_vm1 = vmmov 1   ;;  %vm254_vm3 = vcmask 80896  }
  0x16   : > { %v250_v2 = vld [vmem:[%s5981_s2] sm:$0xff]  ;;  %v4335_v3 = vpack.c.bf16 %v253_v1, %v252_v0  ;;  %vm4336_vm2 = vmpackc.low %vm261_vm0, %vm4539_vm1  ;;  %v251_v4 = vld [vmem:[%s5981_s2 + $0x8] sm:$0xff]  ;;  %p245_p10 = scmp.lt.s32.totalorder %s4608_s25, 1  ;;  %vm342_vm4 = vcmask 130048   ;;  %s4540_s15 = smov 16   ;;  %vm417_vm5 = vcmask 261248  }
  0x17   : > { %4020 = vmatprep.mubr.msk.f32.mxu0 %vm254_vm3, %v250_v2  ;;  %v548_v5 = vld [vmem:[%s5980_s1] sm:$0xff]  ;;  %v549_v6 = vld [vmem:[%s5980_s1 + $0x8] sm:$0xff]  ;;  %v3667_v23 = vld [vmem:[%s5980_s1 + $0x10] sm:$0xff]  ;;  %s4541_s16 = smov 32   ;;  %s4542_s17 = smov 48   ;;  %vm438_vm6 = vcmask 392448  }
  0x18   : > { %4337 = vmatprep.subr.msk.bf16.mxu0 %vm4336_vm2, %v4335_v3  ;;  %v4341_v7 = vpack.c.bf16 %v549_v6, %v548_v5  ;;  %s246_s26 = scalar_select %p245_p10, %s4608_s25, 1  ;;  %v3668_v24 = vld [vmem:[%s5980_s1 + $0x18] sm:$0xff]  ;;  %vm459_vm7 = vcmask 523648   ;;  %vm480_vm8 = vcmask 654848   ;;  %vm501_vm9 = vcmask 786048  }
  0x19   : > { %4340 = vmatpush3.bf16.msk.msra.mxu0 %vm4336_vm2, %v4335_v3  ;;  %v4747_v25 = vpack.c.bf16 %v3668_v24, %v3667_v23  ;;  %s4543_s18 = smov 64   ;;  %s4544_s19 = smov 80   ;;  %vm522_vm10 = vcmask 917248   ;;  %vm543_vm11 = vcmask 1048448   ;;  %vm3415_vm12 = vcmask 785408  }
  0x1a   : > { %4342 = vmatprep.subr.bf16.mxu0 %v4341_v7  ;;  %s3806_s28 = sshll.u32 %s246_s26, 8  ;;  %4407 = vmatprep.subr.bf16.mxu1 %v4341_v7  ;;  %s4545_s20 = smov 96  }
  0x1b   : > { %s4658_s10 = scalar_lea.vmem %s5979_s0, %s3806_s28  ;;  %4408 = vmatpush3.bf16.msra.mxu1 %v4341_v7  ;;  %s4546_s26 = smov 112  }
  0x1c   : > { %4021 = vmatmul.mubr.msk.f32.vlgmr.msra.gmra.mrb[0].mxu0 %vm254_vm3, %v251_v4  ;;  %v4661_v8 = vld [vmem:[%s4658_s10] sm:$0xff]  ;;  %v4666_v9 = vld [vmem:[%s4658_s10 + $0x8] sm:$0xff]  ;;  %v4675_v10 = vld [vmem:[%s4658_s10 + $0x10] sm:$0xff]  ;;  %4350 = vmatprep.subr.bf16.mxu1 %v4747_v25 }
  0x1d   : > { %4344 = vmatpush3.bf16.msra.mxu0 %v4341_v7  ;;  %4027 = vmatprep.mubr.msk.f32.mxu0 %vm342_vm4, %v4661_v8  ;;  %6011 = vst [vmem:[#allocation6_spill] sm:$0xff] %v4666_v9  ;;  %397 = vst.msk [vmem:[#allocation2] sm:$0xff] %vm342_vm4, %v4661_v8  ;;  %v4680_v11 = vld [vmem:[%s4658_s10 + $0x18] sm:$0xff]  ;;  %v4689_v12 = vld [vmem:[%s4658_s10 + $0x20] sm:$0xff] }
  0x1e   : > { %4346 = vmatprep.subr.bf16.mxu0 %v4341_v7  ;;  %398 = vst.msk [vmem:[#allocation2 + $0x8] sm:$0xff] %vm342_vm4, %v4666_v9  ;;  %6012 = vst [vmem:[#allocation7_spill] sm:$0xff] %v4675_v10  ;;  %4030 = vmatprep.mubr.msk.f32.mxu1 %vm342_vm4, %v4675_v10  ;;  %v4694_v13 = vld [vmem:[%s4658_s10 + $0x28] sm:$0xff]  ;;  %v4699_v14 = vld [vmem:[%s4658_s10 + $0x30] sm:$0xff] }
  0x1f   : > { %6013 = vst [vmem:[#allocation8_spill] sm:$0xff] %v4680_v11  ;;  %399 = vst.msk [vmem:[#allocation2 + $0x10] sm:$0xff] %vm342_vm4, %v4675_v10  ;;  %4031 = vmatmul.mubr.msk.f32.vlgmr.msra.gmra.mrb[0].mxu1 %vm342_vm4, %v4680_v11  ;;  %v4704_v15 = vld [vmem:[%s4658_s10 + $0x38] sm:$0xff]  ;;  %v4709_v16 = vld [vmem:[%s4658_s10 + $0x40] sm:$0xff] }
  0x20   : > { %4028 = vmatmul.mubr.msk.f32.vlgmr.msra.gmra.mrb[2].mxu0 %vm342_vm4, %v4666_v9  ;;  %400 = vst.msk [vmem:[#allocation2 + $0x18] sm:$0xff] %vm342_vm4, %v4680_v11  ;;  %6014 = vst [vmem:[#allocation9_spill] sm:$0xff] %v4689_v12  ;;  %4033 = vmatprep.mubr.msk.f32.mxu1 %vm342_vm4, %v4689_v12  ;;  %v4714_v17 = vld [vmem:[%s4658_s10 + $0x48] sm:$0xff]  ;;  %v4719_v18 = vld [vmem:[%s4658_s10 + $0x50] sm:$0xff] }
  0x21   : > { %4348 = vmatpush3.bf16.msra.mxu0 %v4341_v7  ;;  %6015 = vst [vmem:[#allocation10_spill] sm:$0xff] %v4694_v13  ;;  %6016 = vst [vmem:[#allocation11_spill] sm:$0xff] %v4704_v15  ;;  %v4724_v19 = vld [vmem:[%s4658_s10 + $0x58] sm:$0xff]  ;;  %v4727_v20 = vld [vmem:[%s4658_s10 + $0x60] sm:$0xff]  ;;  %4352 = vmatpush3.bf16.msra.mxu1 %v4747_v25 }
  0x22   : > { %6017 = vst [vmem:[#allocation12_spill] sm:$0xff] %v4709_v16  ;;  %6018 = vst [vmem:[#allocation13_spill] sm:$0xff] %v4719_v18  ;;  %v4734_v21 = vld [vmem:[%s4658_s10 + $0x68] sm:$0xff]  ;;  %v4737_v22 = vld [vmem:[%s4658_s10 + $0x70] sm:$0xff]  ;;  %4354 = vmatprep.subr.bf16.mxu0 %v4747_v25 }
  0x23   : > { %4034 = vmatmul.mubr.msk.f32.gmra.mrb[2].mxu1 %vm342_vm4, %v4694_v13  ;;  %6019 = vst [vmem:[#allocation14_spill] sm:$0xff] %v4727_v20  ;;  %6020 = vst [vmem:[#allocation15_spill] sm:$0xff] %v4737_v22  ;;  %v4752_v26 = vld [vmem:[%s4658_s10 + $0x78] sm:$0xff]  ;;  %v4755_v27 = vld [vmem:[%s4658_s10 + $0x80] sm:$0xff] }
  0x24   : > { %4036 = vmatprep.mubr.msk.f32.mxu1 %vm342_vm4, %v4699_v14  ;;  %6021 = vst [vmem:[#allocation16_spill] sm:$0xff] %v4755_v27  ;;  %v4765_v28 = vld [vmem:[%s4658_s10 + $0x88] sm:$0xff]  ;;  %v4768_v29 = vld [vmem:[%s4658_s10 + $0x90] sm:$0xff]  ;;  %v4775_v30 = vld [vmem:[%s4658_s10 + $0x98] sm:$0xff] }
  0x25   : > { %6022 = vst [vmem:[#allocation17_spill] sm:$0xff] %v4768_v29  ;;  %v4778_v31 = vld [vmem:[%s4658_s10 + $0xa0] sm:$0xff]  ;;  %v4785_v32 = vld [vmem:[%s4658_s10 + $0xa8] sm:$0xff]  ;;  %v4788_v33 = vld [vmem:[%s4658_s10 + $0xb0] sm:$0xff] }
  0x26   : > { %6023 = vst [vmem:[#allocation18_spill] sm:$0xff] %v4778_v31  ;;  %6024 = vst [vmem:[#allocation19_spill] sm:$0xff] %v4788_v33  ;;  %v4795_v34 = vld [vmem:[%s4658_s10 + $0xb8] sm:$0xff]  ;;  %v4798_v35 = vld [vmem:[%s4658_s10 + $0xc0] sm:$0xff] }
  0x27   : > { %4037 = vmatmul.mubr.msk.f32.gmra.mrb[4].mxu1 %vm342_vm4, %v4704_v15  ;;  %6025 = vst [vmem:[#allocation20_spill] sm:$0xff] %v4798_v35  ;;  %v4805_v36 = vld [vmem:[%s4658_s10 + $0xc8] sm:$0xff]  ;;  %v4808_v37 = vld [vmem:[%s4658_s10 + $0xd0] sm:$0xff]  ;;  %v4815_v38 = vld [vmem:[%s4658_s10 + $0xd8] sm:$0xff] }
  0x28   : > { %4039 = vmatprep.mubr.msk.f32.mxu1 %vm342_vm4, %v4709_v16  ;;  %6026 = vst [vmem:[#allocation21_spill] sm:$0xff] %v4808_v37  ;;  %v4818_v39 = vld [vmem:[%s4658_s10 + $0xe0] sm:$0xff]  ;;  %v4825_v40 = vld [vmem:[%s4658_s10 + $0xe8] sm:$0xff]  ;;  %v4828_v41 = vld [vmem:[%s4658_s10 + $0xf0] sm:$0xff] }
  0x29   : > { %v4835_v42 = vld [vmem:[%s4658_s10 + $0xf8] sm:$0xff] }
  0x2b   : > { %4040 = vmatmul.mubr.msk.f32.gmra.mrb[6].mxu1 %vm342_vm4, %v4714_v17 }
  0x2c   : > { %4042 = vmatprep.mubr.msk.f32.mxu1 %vm342_vm4, %v4719_v18 }
  0x2f   : > { %4043 = vmatmul.mubr.msk.f32.gmra.mrb[8].mxu1 %vm342_vm4, %v4724_v19 }
  0x30   : > { %4045 = vmatprep.mubr.msk.f32.mxu1 %vm342_vm4, %v4727_v20 }
  0x33   : > { %4046 = vmatmul.mubr.msk.f32.gmra.mrb[10].mxu1 %vm342_vm4, %v4734_v21 }
  0x34   : > { %4048 = vmatprep.mubr.msk.f32.mxu1 %vm342_vm4, %v4737_v22 }
  0x37   : > { %4049 = vmatmul.mubr.msk.f32.gmra.mrb[12].mxu1 %vm342_vm4, %v4752_v26 }
  0x38   : > { %4051 = vmatprep.mubr.msk.f32.mxu1 %vm342_vm4, %v4755_v27 }
  0x3b   : > { %4052 = vmatmul.mubr.msk.f32.gmra.mrb[14].mxu1 %vm342_vm4, %v4765_v28 }
  0x3c   : > { %4054 = vmatprep.mubr.msk.f32.mxu1 %vm342_vm4, %v4768_v29 }
  0x3f   : > { %4055 = vmatmul.mubr.msk.f32.gmra.mrb[16].mxu1 %vm342_vm4, %v4775_v30 }
  0x40   : > { %4057 = vmatprep.mubr.msk.f32.mxu1 %vm342_vm4, %v4778_v31 }
  0x43   : > { %4058 = vmatmul.mubr.msk.f32.gmra.mrb[18].mxu1 %vm342_vm4, %v4785_v32 }
  0x44   : > { %4060 = vmatprep.mubr.msk.f32.mxu1 %vm342_vm4, %v4788_v33 }
  0x47   : > { %4061 = vmatmul.mubr.msk.f32.gmra.mrb[20].mxu1 %vm342_vm4, %v4795_v34 }
  0x48   : > { %4063 = vmatprep.mubr.msk.f32.mxu1 %vm342_vm4, %v4798_v35 }
  0x4b   : > { %4064 = vmatmul.mubr.msk.f32.gmra.mrb[22].mxu1 %vm342_vm4, %v4805_v36 }
  0x4c   : > { %4066 = vmatprep.mubr.msk.f32.mxu1 %vm342_vm4, %v4808_v37 }
  0x4f   : > { %4067 = vmatmul.mubr.msk.f32.gmra.mrb[24].mxu1 %vm342_vm4, %v4815_v38 }
  0x50   : > { %4069 = vmatprep.mubr.msk.f32.mxu1 %vm342_vm4, %v4818_v39 }
  0x53   : > { %4070 = vmatmul.mubr.msk.f32.gmra.mrb[26].mxu1 %vm342_vm4, %v4825_v40 }
  0x54   : > { %4072 = vmatprep.mubr.msk.f32.mxu1 %vm342_vm4, %v4828_v41 }
  0x57   : > { %4073 = vmatmul.mubr.msk.f32.gmra.mrb[28].mxu1 %vm342_vm4, %v4835_v42 }
  0x58   : > { %4131 = vmatprep.mubr.msk.f32.mxu1 %vm342_vm4, %v4661_v8 }
  0x5b   : > { %4132 = vmatmul.mubr.msk.f32.vlgmr.msra.gmra.mrb[30].mxu1 %vm342_vm4, %v4666_v9 }
  0x5c   : > { %4134 = vmatprep.mubr.msk.f32.mxu1 %vm342_vm4, %v4675_v10 }
  0x5f   : > { %4135 = vmatmul.mubr.msk.f32.gmra.mrb[32].mxu1 %vm342_vm4, %v4680_v11 }
  0x60   : > { %4137 = vmatprep.mubr.msk.f32.mxu1 %vm342_vm4, %v4689_v12 }
  0x63   : > { %4138 = vmatmul.mubr.msk.f32.gmra.mrb[34].mxu1 %vm342_vm4, %v4694_v13 }
  0x64   : > { %4140 = vmatprep.mubr.msk.f32.mxu1 %vm342_vm4, %v4699_v14 }
  0x67   : > { %4141 = vmatmul.mubr.msk.f32.gmra.mrb[36].mxu1 %vm342_vm4, %v4704_v15 }
  0x68   : > { %4143 = vmatprep.mubr.msk.f32.mxu1 %vm342_vm4, %v4709_v16 }
  0x6b   : > { %4144 = vmatmul.mubr.msk.f32.gmra.mrb[38].mxu1 %vm342_vm4, %v4714_v17 }
  0x6c   : > { %4146 = vmatprep.mubr.msk.f32.mxu1 %vm342_vm4, %v4719_v18 }
  0x6f   : > { %4147 = vmatmul.mubr.msk.f32.gmra.mrb[40].mxu1 %vm342_vm4, %v4724_v19 }
  0x70   : > { %4149 = vmatprep.mubr.msk.f32.mxu1 %vm342_vm4, %v4727_v20 }
  0x73   : > { %4150 = vmatmul.mubr.msk.f32.gmra.mrb[42].mxu1 %vm342_vm4, %v4734_v21 }
  0x74   : > { %4152 = vmatprep.mubr.msk.f32.mxu1 %vm342_vm4, %v4737_v22 }
  0x77   : > { %4153 = vmatmul.mubr.msk.f32.gmra.mrb[44].mxu1 %vm342_vm4, %v4752_v26 }
  0x78   : > { %4155 = vmatprep.mubr.msk.f32.mxu1 %vm342_vm4, %v4755_v27 }
  0x7b   : > { %4156 = vmatmul.mubr.msk.f32.gmra.mrb[46].mxu1 %vm342_vm4, %v4765_v28 }
  0x7c   : > { %4158 = vmatprep.mubr.msk.f32.mxu1 %vm342_vm4, %v4768_v29 }
  0x7f   : > { %4159 = vmatmul.mubr.msk.f32.gmra.mrb[48].mxu1 %vm342_vm4, %v4775_v30 }
  0x80   : > { %4161 = vmatprep.mubr.msk.f32.mxu1 %vm342_vm4, %v4778_v31 }
  0x83   : > { %4162 = vmatmul.mubr.msk.f32.gmra.mrb[50].mxu1 %vm342_vm4, %v4785_v32 }
  0x84   : > { %4164 = vmatprep.mubr.msk.f32.mxu1 %vm342_vm4, %v4788_v33 }
  0x87   : > { %4165 = vmatmul.mubr.msk.f32.gmra.mrb[52].mxu1 %vm342_vm4, %v4795_v34 }
  0x88   : > { %4167 = vmatprep.mubr.msk.f32.mxu1 %vm342_vm4, %v4798_v35 }
  0x8b   : > { %4168 = vmatmul.mubr.msk.f32.gmra.mrb[54].mxu1 %vm342_vm4, %v4805_v36 }
  0x8c   : > { %4170 = vmatprep.mubr.msk.f32.mxu1 %vm342_vm4, %v4808_v37 }
  0x8f   : > { %4171 = vmatmul.mubr.msk.f32.gmra.mrb[56].mxu1 %vm342_vm4, %v4815_v38 }
  0x90   : > { %4173 = vmatprep.mubr.msk.f32.mxu1 %vm342_vm4, %v4818_v39 }
  0x93   : > { %4174 = vmatmul.mubr.msk.f32.gmra.mrb[58].mxu1 %vm342_vm4, %v4825_v40 }
  0x94   : > { %4176 = vmatprep.mubr.msk.f32.mxu1 %vm342_vm4, %v4828_v41 }
  0x97   : > { %4177 = vmatmul.mubr.msk.f32.gmra.mrb[60].mxu1 %vm342_vm4, %v4835_v42 }
  0x98   : > { %4235 = vmatprep.mubr.msk.f32.mxu1 %vm342_vm4, %v4661_v8 }
  0xef   : > { %v4905_v43 = vpop.f32.mrb[0].mxu0 }
  0xf0   : > { %v4907_v44 = vpop.f32.mrb[1].mxu0  ;;  %v5986_v46 = vmax.f32 %v4905_v43, 0.0 }
  0xf1   : > { %v5987_v45 = vmax.f32 %v4907_v44, 0.0 }
  0xf2   : > { %v346_v48 = vsel %vm342_vm4, %v5986_v46, -inf  ;;  %v4032_v51 = vpop.f32.mrb[0].mxu1 }
  0xf3   : > { %v343_v47 = vsel %vm342_vm4, %v5987_v45, -inf  ;;  %v4029_v49 = vpop.f32.mrb[2].mxu0  ;;  %906 = vst.msk [vmem:[#allocation2 + $0x38] sm:$0xff] %vm342_vm4, %v4032_v51  ;;  %v754_v52 = vpop.f32.mrb[1].mxu1 }
  0xf4   : > { %344 = vmax.xlane.f32.xlu0 %v343_v47  ;;  %904 = vst.msk [vmem:[#allocation2 + $0x28] sm:$0xff] %vm342_vm4, %v4029_v49  ;;  %v744_v50 = vpop.f32.mrb[3].mxu0  ;;  %905 = vst.msk [vmem:[#allocation2 + $0x30] sm:$0xff] %vm342_vm4, %v754_v52 }
  0xf5   : > { %903 = vst.msk [vmem:[#allocation2 + $0x20] sm:$0xff] %vm342_vm4, %v744_v50  ;;  %4079 = vmatprep.mubr.msk.f32.mxu0 %vm342_vm4, %v744_v50 }
  0xf6   : > { %4080 = vmatmul.mubr.msk.f32.vlgmr.msra.gmra.mrb[4].mxu0 %vm342_vm4, %v4029_v49  ;;  %v4926_v53 = vpop.f32.mrb[2].mxu1 }
  0xf7   : > { %4356 = vmatpush3.bf16.msra.mxu0 %v4747_v25  ;;  %4082 = vmatprep.mubr.msk.f32.mxu0 %vm342_vm4, %v754_v52  ;;  %v4928_v54 = vpop.f32.mrb[3].mxu1 }
  0xf8   : > { %347 = vmax.xlane.f32.xlu0 %v346_v48 }
  0xfa   : > { %4083 = vmatmul.mubr.msk.f32.gmra.mrb[6].mxu0 %vm342_vm4, %v4032_v51  ;;  %v4934_v55 = vpop.f32.mrb[4].mxu1 }
  0xfb   : > { %4085 = vmatprep.mubr.msk.f32.mxu0 %vm342_vm4, %v4928_v54  ;;  %v4936_v56 = vpop.f32.mrb[5].mxu1 }
  0xfe   : > { %4086 = vmatmul.mubr.msk.f32.gmra.mrb[8].mxu0 %vm342_vm4, %v4926_v53  ;;  %v4942_v57 = vpop.f32.mrb[6].mxu1 }
  0xff   : > { %4088 = vmatprep.mubr.msk.f32.mxu0 %vm342_vm4, %v4936_v56  ;;  %v4944_v58 = vpop.f32.mrb[7].mxu1 }
 0x102   : > { %4089 = vmatmul.mubr.msk.f32.gmra.mrb[10].mxu0 %vm342_vm4, %v4934_v55  ;;  %v4950_v59 = vpop.f32.mrb[8].mxu1 }
 0x103   : > { %4091 = vmatprep.mubr.msk.f32.mxu0 %vm342_vm4, %v4944_v58  ;;  %v4952_v60 = vpop.f32.mrb[9].mxu1 }
 0x106   : > { %4092 = vmatmul.mubr.msk.f32.gmra.mrb[12].mxu0 %vm342_vm4, %v4942_v57  ;;  %v4958_v61 = vpop.f32.mrb[10].mxu1 }
 0x107   : > { %4094 = vmatprep.mubr.msk.f32.mxu0 %vm342_vm4, %v4952_v60  ;;  %v4960_v62 = vpop.f32.mrb[11].mxu1 }
 0x10a   : > { %4095 = vmatmul.mubr.msk.f32.gmra.mrb[14].mxu0 %vm342_vm4, %v4950_v59  ;;  %v4966_v63 = vpop.f32.mrb[12].mxu1 }
 0x10b   : > { %4097 = vmatprep.mubr.msk.f32.mxu0 %vm342_vm4, %v4960_v62  ;;  %v4968_v0 = vpop.f32.mrb[13].mxu1 }
 0x10e   : > { %4098 = vmatmul.mubr.msk.f32.gmra.mrb[16].mxu0 %vm342_vm4, %v4958_v61  ;;  %v4974_v1 = vpop.f32.mrb[14].mxu1  ;;  %405 = vrot.lane.b32.xlu0 %v4689_v12, %s4540_s15 }
 0x10f   : > { %4100 = vmatprep.mubr.msk.f32.mxu0 %vm342_vm4, %v4968_v0  ;;  %v4976_v2 = vpop.f32.mrb[15].mxu1 }
 0x112   : > { %4101 = vmatmul.mubr.msk.f32.gmra.mrb[18].mxu0 %vm342_vm4, %v4966_v63  ;;  %v4982_v3 = vpop.f32.mrb[16].mxu1  ;;  %426 = vrot.lane.b32.xlu0 %v4709_v16, %s4541_s16  ;;  %v6027_v16 = vmax.f32 %v4907_v44, 0.0  ;;  %v6028_v44 = vmax.f32 %v4905_v43, 0.0 }
 0x113   : > { %4103 = vmatprep.mubr.msk.f32.mxu0 %vm342_vm4, %v4976_v2  ;;  %v4984_v4 = vpop.f32.mrb[17].mxu1 }
 0x116   : > { %4104 = vmatmul.mubr.msk.f32.gmra.mrb[20].mxu0 %vm342_vm4, %v4974_v1  ;;  %v4990_v5 = vpop.f32.mrb[18].mxu1  ;;  %430 = vrot.lane.b32.xlu0 %v4719_v18, %s4541_s16 }
 0x117   : > { %4106 = vmatprep.mubr.msk.f32.mxu0 %vm342_vm4, %v4984_v4  ;;  %v4992_v6 = vpop.f32.mrb[19].mxu1 }
 0x11a   : > { %4107 = vmatmul.mubr.msk.f32.gmra.mrb[22].mxu0 %vm342_vm4, %v4982_v3  ;;  %v4998_v7 = vpop.f32.mrb[20].mxu1  ;;  %447 = vrot.lane.b32.xlu0 %v4727_v20, %s4542_s17 }
 0x11b   : > { %4109 = vmatprep.mubr.msk.f32.mxu0 %vm342_vm4, %v4992_v6  ;;  %v5000_v8 = vpop.f32.mrb[21].mxu1 }
 0x11e   : > { %4110 = vmatmul.mubr.msk.f32.gmra.mrb[24].mxu0 %vm342_vm4, %v4990_v5  ;;  %v5006_v23 = vpop.f32.mrb[22].mxu1  ;;  %451 = vrot.lane.b32.xlu0 %v4737_v22, %s4542_s17 }
 0x11f   : > { %4112 = vmatprep.mubr.msk.f32.mxu0 %vm342_vm4, %v5000_v8  ;;  %v5008_v24 = vpop.f32.mrb[23].mxu1 }
 0x122   : > { %4113 = vmatmul.mubr.msk.f32.gmra.mrb[26].mxu0 %vm342_vm4, %v4998_v7  ;;  %v5014_v25 = vpop.f32.mrb[24].mxu1  ;;  %468 = vrot.lane.b32.xlu0 %v4755_v27, %s4543_s18 }
 0x123   : > { %4115 = vmatprep.mubr.msk.f32.mxu0 %vm342_vm4, %v5008_v24  ;;  %v5018_v47 = vpop.f32.mrb[25].mxu1 }
 0x126   : > { %4116 = vmatmul.mubr.msk.f32.gmra.mrb[28].mxu0 %vm342_vm4, %v5006_v23  ;;  %v5024_v48 = vpop.f32.mrb[26].mxu1  ;;  %472 = vrot.lane.b32.xlu0 %v4768_v29, %s4543_s18 }
 0x127   : > { %4118 = vmatprep.mubr.msk.f32.mxu0 %vm342_vm4, %v5018_v47  ;;  %v5026_v49 = vpop.f32.mrb[27].mxu1 }
 0x12a   : > { %4119 = vmatmul.mubr.msk.f32.gmra.mrb[30].mxu0 %vm342_vm4, %v5014_v25  ;;  %v5032_v50 = vpop.f32.mrb[28].mxu1  ;;  %489 = vrot.lane.b32.xlu0 %v4778_v31, %s4544_s19 }
 0x12b   : > { %4121 = vmatprep.mubr.msk.f32.mxu0 %vm342_vm4, %v5026_v49  ;;  %v5034_v51 = vpop.f32.mrb[29].mxu1 }
 0x12e   : > { %4122 = vmatmul.mubr.msk.f32.gmra.mrb[32].mxu0 %vm342_vm4, %v5024_v48  ;;  %v4133_v52 = vpop.f32.mrb[30].mxu1  ;;  %493 = vrot.lane.b32.xlu0 %v4788_v33, %s4544_s19 }
 0x12f   : > { %4124 = vmatprep.mubr.msk.f32.mxu0 %vm342_vm4, %v5034_v51  ;;  %1841 = vst.msk [vmem:[#allocation2 + $0x68] sm:$0xff] %vm342_vm4, %v4133_v52  ;;  %v1681_v46 = vpop.f32.mrb[31].mxu1 }
 0x130   : > { %1840 = vst.msk [vmem:[#allocation2 + $0x60] sm:$0xff] %vm342_vm4, %v1681_v46 }
 0x132   : > { %4125 = vmatmul.mubr.msk.f32.gmra.mrb[34].mxu0 %vm342_vm4, %v5032_v50  ;;  %v4136_v45 = vpop.f32.mrb[32].mxu1  ;;  %510 = vrot.lane.b32.xlu0 %v4798_v35, %s4545_s20 }
 0x133   : > { %4183 = vmatprep.mubr.msk.f32.mxu0 %vm342_vm4, %v1681_v46  ;;  %1843 = vst.msk [vmem:[#allocation2 + $0x78] sm:$0xff] %vm342_vm4, %v4136_v45  ;;  %v1691_v11 = vpop.f32.mrb[33].mxu1 }
 0x134   : > { %1842 = vst.msk [vmem:[#allocation2 + $0x70] sm:$0xff] %vm342_vm4, %v1691_v11 }
 0x136   : > { %4184 = vmatmul.mubr.msk.f32.vlgmr.msra.gmra.mrb[36].mxu0 %vm342_vm4, %v4133_v52  ;;  %v5056_v52 = vpop.f32.mrb[34].mxu1  ;;  %514 = vrot.lane.b32.xlu0 %v4808_v37, %s4545_s20 }
 0x137   : > { %4186 = vmatprep.mubr.msk.f32.mxu0 %vm342_vm4, %v1691_v11  ;;  %v5058_v9 = vpop.f32.mrb[35].mxu1 }
 0x13a   : > { %4187 = vmatmul.mubr.msk.f32.gmra.mrb[38].mxu0 %vm342_vm4, %v4136_v45  ;;  %531 = vrot.lane.b32.xlu0 %v4818_v39, %s4546_s26 }
 0x13b   : > { %4189 = vmatprep.mubr.msk.f32.mxu0 %vm342_vm4, %v5058_v9 }
 0x13e   : > { %4190 = vmatmul.mubr.msk.f32.gmra.mrb[40].mxu0 %vm342_vm4, %v5056_v52  ;;  %535 = vrot.lane.b32.xlu0 %v4828_v41, %s4546_s26 }
 0x142   : > { %911 = vrot.lane.b32.xlu0 %v4928_v54, %s4540_s15 }
 0x146   : > { %915 = vrot.lane.b32.xlu0 %v4936_v56, %s4540_s15 }
 0x14a   : > { %933 = vrot.lane.b32.xlu0 %v4942_v57, %s4541_s16 }
 0x14e   : > { %953 = vrot.lane.b32.xlu0 %v4958_v61, %s4542_s17 }
 0x152   : > { %973 = vrot.lane.b32.xlu0 %v4974_v1, %s4543_s18 }
 0x156   : > { %991 = vrot.lane.b32.xlu0 %v4992_v6, %s4544_s19 }
 0x15a   : > { %935 = vrot.lane.b32.xlu0 %v4952_v60, %s4541_s16 }
 0x15e   : > { %1011 = vrot.lane.b32.xlu0 %v5008_v24, %s4545_s20 }
 0x162   : > { %955 = vrot.lane.b32.xlu0 %v4968_v0, %s4542_s17 }
 0x166   : > { %1031 = vrot.lane.b32.xlu0 %v5026_v49, %s4546_s26 }
 0x16a   : > { %975 = vrot.lane.b32.xlu0 %v4984_v4, %s4543_s18 }
 0x16e   : > { %995 = vrot.lane.b32.xlu0 %v5000_v8, %s4544_s19 }
 0x172   : > { %1015 = vrot.lane.b32.xlu0 %v5018_v47, %s4545_s20 }
 0x176   : > { %1035 = vrot.lane.b32.xlu0 %v5034_v51, %s4546_s26 }
 0x17a   : > { %1848 = vrot.lane.b32.xlu0 %v5058_v9, %s4540_s15 }
 0x181   : > { %v345_v12 = vpop.xlane.xlu0 %344 }
 0x182   : > { %v349_v10 = vsub.f32 %v6027_v16, %v345_v12 }
 0x184   : > { %v351_v46 = vmul.f32 1.442695, %v349_v10  ;;  %v5068_v10 = vpop.f32.mrb[36].mxu1 }
 0x185   : > { %v348_v18 = vpop.xlane.xlu0 %347  ;;  %v5070_v16 = vpop.f32.mrb[37].mxu1 }
 0x186   : > { %4462 = vpow2.f32 %v351_v46  ;;  %v350_v12 = vsub.f32 %v6028_v44, %v348_v18  ;;  %4192 = vmatprep.mubr.msk.f32.mxu0 %vm342_vm4, %v5070_v16  ;;  %v5078_v18 = vpop.f32.mrb[38].mxu1 }
 0x187   : > { %4193 = vmatmul.mubr.msk.f32.gmra.mrb[42].mxu0 %vm342_vm4, %v5068_v10  ;;  %v5080_v43 = vpop.f32.mrb[39].mxu1 }
 0x188   : > { %v353_v11 = vmul.f32 1.442695, %v350_v12  ;;  %4195 = vmatprep.mubr.msk.f32.mxu0 %vm342_vm4, %v5080_v43  ;;  %v5090_v46 = vpop.f32.mrb[40].mxu1  ;;  %1868 = vrot.lane.b32.xlu0 %v5080_v43, %s4541_s16 }
 0x189   : > { %6029 = vst [vmem:[#allocation22_spill] sm:$0xff] %v5090_v46  ;;  %v5094_v12 = vpop.f32.mrb[41].mxu1 }
 0x18a   : > { %4464 = vpow2.f32 %v353_v11  ;;  %v5104_v29 = vpop.f32.mrb[42].mxu1 }
 0x18b   : > { %4196 = vmatmul.mubr.msk.f32.gmra.mrb[44].mxu0 %vm342_vm4, %v5078_v18  ;;  %v5108_v22 = vpop.f32.mrb[43].mxu1 }
 0x18c   : > { %4198 = vmatprep.mubr.msk.f32.mxu0 %vm342_vm4, %v5094_v12  ;;  %1888 = vrot.lane.b32.xlu0 %v5108_v22, %s4542_s17 }
 0x18f   : > { %4199 = vmatmul.mubr.msk.f32.gmra.mrb[46].mxu0 %vm342_vm4, %v5090_v46 }
 0x190   : > { %v5088_v45 = vpop.eup %4462  ;;  %4201 = vmatprep.mubr.msk.f32.mxu0 %vm342_vm4, %v5108_v22 }
 0x191   : > { %v355_v44 = vsel %vm342_vm4, %v5088_v45, 0.0 }
 0x192   : > { %356 = vadd.xlane.f32.xlu1 %v355_v44  ;;  %v5116_v44 = vpop.f32.mrb[44].mxu1 }
 0x193   : > { %4202 = vmatmul.mubr.msk.f32.gmra.mrb[48].mxu0 %vm342_vm4, %v5104_v29  ;;  %6030 = vst [vmem:[#allocation23_spill] sm:$0xff] %v5116_v44  ;;  %v5118_v31 = vpop.f32.mrb[45].mxu1 }
 0x194   : > { %v5102_v11 = vpop.eup %4464  ;;  %4204 = vmatprep.mubr.msk.f32.mxu0 %vm342_vm4, %v5118_v31 }
 0x195   : > { %v358_v27 = vsel %vm342_vm4, %v5102_v11, 0.0 }
 0x196   : > { %359 = vadd.xlane.f32.xlu1 %v358_v27  ;;  %v5126_v27 = vpop.f32.mrb[46].mxu1 }
 0x197   : > { %4205 = vmatmul.mubr.msk.f32.gmra.mrb[50].mxu0 %vm342_vm4, %v5116_v44  ;;  %v5128_v20 = vpop.f32.mrb[47].mxu1 }
 0x198   : > { %4207 = vmatprep.mubr.msk.f32.mxu0 %vm342_vm4, %v5128_v20  ;;  %v5136_v33 = vpop.f32.mrb[48].mxu1  ;;  %1908 = vrot.lane.b32.xlu0 %v5128_v20, %s4543_s18 }
 0x199   : > { %6031 = vst [vmem:[#allocation24_spill] sm:$0xff] %v5136_v33  ;;  %v5138_v44 = vpop.f32.mrb[49].mxu1 }
 0x19a   : > { %v5146_v35 = vpop.f32.mrb[50].mxu1 }
 0x19b   : > { %4208 = vmatmul.mubr.msk.f32.gmra.mrb[52].mxu0 %vm342_vm4, %v5126_v27  ;;  %v5148_v46 = vpop.f32.mrb[51].mxu1 }
 0x19c   : > { %4210 = vmatprep.mubr.msk.f32.mxu0 %vm342_vm4, %v5138_v44  ;;  %v5156_v37 = vpop.f32.mrb[52].mxu1  ;;  %1852 = vrot.lane.b32.xlu0 %v5070_v16, %s4540_s15 }
 0x19d   : > { %6032 = vst [vmem:[#allocation25_spill] sm:$0xff] %v5156_v37 }
 0x19f   : > { %4211 = vmatmul.mubr.msk.f32.gmra.mrb[54].mxu0 %vm342_vm4, %v5136_v33  ;;  %v5160_v33 = vpop.f32.mrb[53].mxu1 }
 0x1a0   : > { %4213 = vmatprep.mubr.msk.f32.mxu0 %vm342_vm4, %v5148_v46  ;;  %v5168_v39 = vpop.f32.mrb[54].mxu1  ;;  %1928 = vrot.lane.b32.xlu0 %v5148_v46, %s4544_s19 }
 0x1a3   : > { %4214 = vmatmul.mubr.msk.f32.gmra.mrb[56].mxu0 %vm342_vm4, %v5146_v35 }
 0x1a4   : > { %4216 = vmatprep.mubr.msk.f32.mxu0 %vm342_vm4, %v5160_v33  ;;  %1872 = vrot.lane.b32.xlu0 %v5094_v12, %s4541_s16 }
 0x1a7   : > { %407 = vrot.lane.b32.xlu1 %v4694_v13, %s4540_s15  ;;  %4217 = vmatmul.mubr.msk.f32.gmra.mrb[58].mxu0 %vm342_vm4, %v5156_v37  ;;  %v5172_v13 = vpop.f32.mrb[55].mxu1 }
 0x1a8   : > { %4219 = vmatprep.mubr.msk.f32.mxu0 %vm342_vm4, %v5172_v13  ;;  %v5180_v41 = vpop.f32.mrb[56].mxu1  ;;  %1948 = vrot.lane.b32.xlu0 %v5172_v13, %s4545_s20 }
 0x1a9   : > { %6033 = vst [vmem:[#allocation26_spill] sm:$0xff] %v5180_v41  ;;  %v5184_v37 = vpop.f32.mrb[57].mxu1 }
 0x1aa   : > { %v5192_v54 = vpop.f32.mrb[58].mxu1 }
 0x1ab   : > { %409 = vrot.lane.b32.xlu1 %v4699_v14, %s4540_s15  ;;  %4220 = vmatmul.mubr.msk.f32.gmra.mrb[60].mxu0 %vm342_vm4, %v5168_v39 }
 0x1ac   : > { %4222 = vmatprep.mubr.msk.f32.mxu0 %vm342_vm4, %v5184_v37  ;;  %1892 = vrot.lane.b32.xlu0 %v5118_v31, %s4542_s17 }
 0x1af   : > { %411 = vrot.lane.b32.xlu1 %v4704_v15, %s4540_s15  ;;  %4223 = vmatmul.mubr.msk.f32.gmra.mrb[62].mxu0 %vm342_vm4, %v5180_v41  ;;  %v5196_v15 = vpop.f32.mrb[59].mxu1 }
 0x1b0   : > { %4225 = vmatprep.mubr.msk.f32.mxu0 %vm342_vm4, %v5196_v15  ;;  %v5204_v56 = vpop.f32.mrb[60].mxu1  ;;  %1968 = vrot.lane.b32.xlu0 %v5196_v15, %s4546_s26 }
 0x1b1   : > { %v5208_v41 = vpop.f32.mrb[61].mxu1 }
 0x1b3   : > { %428 = vrot.lane.b32.xlu1 %v4714_v17, %s4541_s16  ;;  %4226 = vmatmul.mubr.msk.f32.gmra.mrb[64].mxu0 %vm342_vm4, %v5192_v54 }
 0x1b4   : > { %4228 = vmatprep.mubr.msk.f32.mxu0 %vm342_vm4, %v5208_v41  ;;  %1912 = vrot.lane.b32.xlu0 %v5138_v44, %s4543_s18  ;;  %v6034_v44 = vld [vmem:[#allocation22_spill] sm:$0xff] }
 0x1b7   : > { %432 = vrot.lane.b32.xlu1 %v4724_v19, %s4541_s16  ;;  %4229 = vmatmul.mubr.msk.f32.gmra.mrb[66].mxu0 %vm342_vm4, %v5204_v56 }
 0x1b8   : > { %1932 = vrot.lane.b32.xlu0 %v5160_v33, %s4544_s19 }
 0x1bb   : > { %449 = vrot.lane.b32.xlu1 %v4734_v21, %s4542_s17 }
 0x1bc   : > { %1952 = vrot.lane.b32.xlu0 %v5184_v37, %s4545_s20 }
 0x1bf   : > { %453 = vrot.lane.b32.xlu1 %v4752_v26, %s4542_s17 }
 0x1c0   : > { %1972 = vrot.lane.b32.xlu0 %v5208_v41, %s4546_s26 }
 0x1c3   : > { %470 = vrot.lane.b32.xlu1 %v4765_v28, %s4543_s18 }
 0x1c7   : > { %474 = vrot.lane.b32.xlu1 %v4775_v30, %s4543_s18 }
 0x1c9   : > { %v4081_v15 = vpop.f32.mrb[4].mxu0 }
 0x1ca   : > { %1341 = vst.msk [vmem:[#allocation2 + $0x48] sm:$0xff] %vm342_vm4, %v4081_v15 }
 0x1cb   : > { %491 = vrot.lane.b32.xlu1 %v4785_v32, %s4544_s19 }
 0x1cf   : > { %495 = vrot.lane.b32.xlu1 %v4795_v34, %s4544_s19 }
 0x1d3   : > { %512 = vrot.lane.b32.xlu1 %v4805_v36, %s4545_s20 }
 0x1d7   : > { %516 = vrot.lane.b32.xlu1 %v4815_v38, %s4545_s20  ;;  %v406_v38 = vpop.permute.xlu0 %405 }
 0x1d8   : > { %418 = vst.msk [vmem:[#allocation2] sm:$0xff] %vm417_vm5, %v406_v38 }
 0x1db   : > { %533 = vrot.lane.b32.xlu1 %v4825_v40, %s4546_s26  ;;  %v427_v40 = vpop.permute.xlu0 %426 }
 0x1dc   : > { %439 = vst.msk [vmem:[#allocation2] sm:$0xff] %vm438_vm6, %v427_v40  ;;  %v6035_v40 = vld [vmem:[#allocation6_spill] sm:$0xff] }
 0x1df   : > { %537 = vrot.lane.b32.xlu1 %v4835_v42, %s4546_s26  ;;  %v5272_v9 = vpop.permute.xlu0 %430 }
 0x1e3   : > { %913 = vrot.lane.b32.xlu1 %v4926_v53, %s4540_s15  ;;  %v448_v22 = vpop.permute.xlu0 %447 }
 0x1e4   : > { %460 = vst.msk [vmem:[#allocation2] sm:$0xff] %vm459_vm7, %v448_v22  ;;  %v6036_v22 = vld [vmem:[#allocation7_spill] sm:$0xff] }
 0x1e7   : > { %931 = vrot.lane.b32.xlu1 %v4944_v58, %s4541_s16  ;;  %v5283_v42 = vpop.permute.xlu0 %451  ;;  %v1181_v58 = vpop.f32.mrb[5].mxu0 }
 0x1e8   : > { %1340 = vst.msk [vmem:[#allocation2 + $0x40] sm:$0xff] %vm342_vm4, %v1181_v58  ;;  %v4084_v60 = vpop.f32.mrb[6].mxu0 }
 0x1e9   : > { %1343 = vst.msk [vmem:[#allocation2 + $0x58] sm:$0xff] %vm342_vm4, %v4084_v60  ;;  %v1191_v33 = vpop.f32.mrb[7].mxu0 }
 0x1ea   : > { %1342 = vst.msk [vmem:[#allocation2 + $0x50] sm:$0xff] %vm342_vm4, %v1191_v33  ;;  %v5331_v61 = vpop.f32.mrb[8].mxu0 }
 0x1eb   : > { %951 = vrot.lane.b32.xlu1 %v4960_v62, %s4542_s17  ;;  %v469_v20 = vpop.permute.xlu0 %468 }
 0x1ec   : > { %481 = vst.msk [vmem:[#allocation2] sm:$0xff] %vm480_vm8, %v469_v20 }
 0x1ef   : > { %971 = vrot.lane.b32.xlu1 %v4976_v2, %s4543_s18  ;;  %v5294_v53 = vpop.permute.xlu0 %472 }
 0x1f3   : > { %917 = vrot.lane.b32.xlu1 %v4934_v55, %s4540_s15  ;;  %v490_v55 = vpop.permute.xlu0 %489 }
 0x1f4   : > { %502 = vst.msk [vmem:[#allocation2] sm:$0xff] %vm501_vm9, %v490_v55  ;;  %v6037_v55 = vld [vmem:[#allocation8_spill] sm:$0xff] }
 0x1f7   : > { %993 = vrot.lane.b32.xlu1 %v4990_v5, %s4544_s19  ;;  %v5305_v57 = vpop.permute.xlu0 %493 }
 0x1fb   : > { %937 = vrot.lane.b32.xlu1 %v4950_v59, %s4541_s16  ;;  %v511_v13 = vpop.permute.xlu0 %510 }
 0x1fc   : > { %523 = vst.msk [vmem:[#allocation2] sm:$0xff] %vm522_vm10, %v511_v13  ;;  %v6038_v13 = vld [vmem:[#allocation9_spill] sm:$0xff] }
 0x1ff   : > { %1013 = vrot.lane.b32.xlu1 %v5006_v23, %s4545_s20  ;;  %v5316_v31 = vpop.permute.xlu0 %514 }
 0x203   : > { %957 = vrot.lane.b32.xlu1 %v4966_v63, %s4542_s17  ;;  %v532_v59 = vpop.permute.xlu0 %531  ;;  %v1201_v63 = vpop.f32.mrb[9].mxu0 }
 0x204   : > { %544 = vst.msk [vmem:[#allocation2] sm:$0xff] %vm543_vm11, %v532_v59  ;;  %1348 = vrot.lane.b32.xlu0 %v1201_v63, %s4540_s15  ;;  %v5336_v37 = vpop.f32.mrb[10].mxu0  ;;  %v6040_v59 = vld [vmem:[#allocation10_spill] sm:$0xff] }
 0x205   : > { %v1211_v1 = vpop.f32.mrb[11].mxu0 }
 0x207   : > { %1033 = vrot.lane.b32.xlu1 %v5024_v48, %s4546_s26  ;;  %v536_v62 = vpop.permute.xlu0 %535 }
 0x208   : > { %1352 = vrot.lane.b32.xlu0 %v1211_v1, %s4540_s15 }
 0x20b   : > { %977 = vrot.lane.b32.xlu1 %v4982_v3, %s4543_s18  ;;  %v912_v0 = vpop.permute.xlu0 %911  ;;  %v5342_v3 = vpop.f32.mrb[12].mxu0 }
 0x20c   : > { %923 = vst.msk [vmem:[#allocation2 + $0x20] sm:$0xff] %vm417_vm5, %v912_v0  ;;  %v1221_v5 = vpop.f32.mrb[13].mxu0  ;;  %v6041_v0 = vld [vmem:[#allocation11_spill] sm:$0xff] }
 0x20d   : > { %1368 = vrot.lane.b32.xlu0 %v1221_v5, %s4541_s16 }
 0x20f   : > { %997 = vrot.lane.b32.xlu1 %v4998_v7, %s4544_s19  ;;  %v916_v4 = vpop.permute.xlu0 %915  ;;  %v5348_v7 = vpop.f32.mrb[14].mxu0 }
 0x210   : > { %925 = vst.msk [vmem:[#allocation2 + $0x30] sm:$0xff] %vm417_vm5, %v916_v4  ;;  %v1231_v23 = vpop.f32.mrb[15].mxu0 }
 0x211   : > { %1372 = vrot.lane.b32.xlu0 %v1231_v23, %s4541_s16  ;;  %v6044_v23 = vld [vmem:[#allocation13_spill] sm:$0xff] }
 0x213   : > { %1017 = vrot.lane.b32.xlu1 %v5014_v25, %s4545_s20  ;;  %v5350_v8 = vpop.permute.xlu0 %933  ;;  %v5356_v25 = vpop.f32.mrb[16].mxu0 }
 0x214   : > { %v1241_v47 = vpop.f32.mrb[17].mxu0 }
 0x215   : > { %1388 = vrot.lane.b32.xlu0 %v1241_v47, %s4542_s17 }
 0x217   : > { %1037 = vrot.lane.b32.xlu1 %v5032_v50, %s4546_s26  ;;  %v5366_v50 = vpop.f32.mrb[18].mxu0 }
 0x218   : > { %v1251_v16 = vpop.f32.mrb[19].mxu0 }
 0x219   : > { %1392 = vrot.lane.b32.xlu0 %v1251_v16, %s4542_s17  ;;  %v6047_v16 = vld [vmem:[#allocation26_spill] sm:$0xff] }
 0x21b   : > { %1850 = vrot.lane.b32.xlu1 %v5056_v52, %s4540_s15 }
 0x21f   : > { %v357_v2 = vpop.xlane.xlu1 %356  ;;  %1870 = vrot.lane.b32.xlu1 %v5078_v18, %s4541_s16 }
 0x220   : > { %4466 = vrcp.f32 %v357_v2  ;;  %v6042_v2 = vld [vmem:[#allocation12_spill] sm:$0xff] }
 0x223   : > { %v360_v6 = vpop.xlane.xlu1 %359  ;;  %1890 = vrot.lane.b32.xlu1 %v5104_v29, %s4542_s17  ;;  %v5358_v29 = vpop.permute.xlu0 %953 }
 0x224   : > { %4468 = vrcp.f32 %v360_v6 }
 0x227   : > { %v408_v24 = vpop.permute.xlu1 %407  ;;  %1910 = vrot.lane.b32.xlu1 %v5126_v27, %s4543_s18  ;;  %v5370_v52 = vpop.permute.xlu0 %973 }
 0x228   : > { %419 = vst.msk [vmem:[#allocation2 + $0x8] sm:$0xff] %vm417_vm5, %v408_v24  ;;  %v6045_v24 = vld [vmem:[#allocation25_spill] sm:$0xff] }
 0x22a   : > { %v4467_v49 = vpop.eup %4466 }
 0x22b   : > { %v410_v48 = vpop.permute.xlu1 %409  ;;  %1854 = vrot.lane.b32.xlu1 %v5068_v10, %s4540_s15  ;;  %v362_v18 = vmul.f32 %v4467_v49, %v5088_v45  ;;  %v5384_v45 = vpop.f32.mrb[20].mxu0 }
 0x22c   : > { %420 = vst.msk [vmem:[#allocation2 + $0x10] sm:$0xff] %vm417_vm5, %v410_v48  ;;  %v5387_v12 = vpop.permute.xlu0 %991 }
 0x22d   : > { %441 = vst.msk [vmem:[#allocation2 + $0x10] sm:$0xff] %vm438_vm6, %v5272_v9 }
 0x22e   : > { %v4469_v51 = vpop.eup %4468  ;;  %462 = vst.msk [vmem:[#allocation2 + $0x10] sm:$0xff] %vm459_vm7, %v5283_v42 }
 0x22f   : > { %v364_v10 = vmul.f32 %v4469_v51, %v5102_v11  ;;  %v412_v43 = vpop.permute.xlu1 %411  ;;  %1930 = vrot.lane.b32.xlu1 %v5146_v35, %s4544_s19  ;;  %483 = vst.msk [vmem:[#allocation2 + $0x10] sm:$0xff] %vm480_vm8, %v5294_v53  ;;  %v1261_v35 = vpop.f32.mrb[21].mxu0  ;;  %v6046_v51 = vld [vmem:[#allocation14_spill] sm:$0xff] }
 0x230   : > { %421 = vst.msk [vmem:[#allocation2 + $0x18] sm:$0xff] %vm417_vm5, %v412_v43  ;;  %1408 = vrot.lane.b32.xlu0 %v1261_v35, %s4543_s18  ;;  %v5393_v27 = vpop.f32.mrb[22].mxu0  ;;  %v936_v41 = vpop.permute.xlu0 %935 }
 0x231   : > { %504 = vst.msk [vmem:[#allocation2 + $0x10] sm:$0xff] %vm501_vm9, %v5305_v57  ;;  %v4357_v46 = vpack.c.bf16 %v364_v10, %v362_v18  ;;  %v1271_v38 = vpop.f32.mrb[23].mxu0 }
 0x232   : > { %525 = vst.msk [vmem:[#allocation2 + $0x10] sm:$0xff] %vm522_vm10, %v5316_v31  ;;  %v5404_v42 = vpop.f32.mrb[24].mxu0  ;;  %v6039_v31 = vld [vmem:[#allocation23_spill] sm:$0xff] }
 0x233   : > { %546 = vst.msk [vmem:[#allocation2 + $0x10] sm:$0xff] %vm543_vm11, %v536_v62  ;;  %4358 = vmatprep.subr.bf16.mxu1 %v4357_v46  ;;  %4362 = vmatprep.subr.bf16.mxu0 %v4357_v46  ;;  %v429_v11 = vpop.permute.xlu1 %428  ;;  %v1281_v53 = vpop.f32.mrb[25].mxu0 }
 0x234   : > { %4360 = vmatpush3.bf16.msra.mxu1 %v4357_v46  ;;  %4364 = vmatpush3.bf16.msra.mxu0 %v4357_v46  ;;  %440 = vst.msk [vmem:[#allocation2 + $0x8] sm:$0xff] %vm438_vm6, %v429_v11  ;;  %945 = vst.msk [vmem:[#allocation2 + $0x30] sm:$0xff] %vm438_vm6, %v936_v41  ;;  %v5406_v20 = vpop.permute.xlu0 %1011  ;;  %v6048_v46 = vld [vmem:[#allocation15_spill] sm:$0xff]  ;;  %v6049_v41 = vld [vmem:[#allocation16_spill] sm:$0xff] }
 0x235   : > { %1874 = vrot.lane.b32.xlu1 %v6034_v44, %s4541_s16  ;;  %1412 = vrot.lane.b32.xlu0 %v1271_v38, %s4543_s18 }
 0x237   : > { %4236 = vmatmul.mubr.msk.f32.vlgmr.msra.gmra.mrb[62].mxu1 %vm342_vm4, %v6035_v40  ;;  %v433_v9 = vpop.permute.xlu1 %432 }
 0x238   : > { %4238 = vmatprep.mubr.msk.f32.mxu1 %vm342_vm4, %v6036_v22  ;;  %442 = vst.msk [vmem:[#allocation2 + $0x18] sm:$0xff] %vm438_vm6, %v433_v9  ;;  %v956_v15 = vpop.permute.xlu0 %955  ;;  %v6050_v9 = vld [vmem:[#allocation17_spill] sm:$0xff] }
 0x239   : > { %1950 = vrot.lane.b32.xlu1 %v5168_v39, %s4545_s20  ;;  %1428 = vrot.lane.b32.xlu0 %v1281_v53, %s4544_s19  ;;  %v5416_v39 = vpop.f32.mrb[26].mxu0  ;;  %965 = vst.msk [vmem:[#allocation2 + $0x30] sm:$0xff] %vm459_vm7, %v956_v15 }
 0x23a   : > { %v1291_v58 = vpop.f32.mrb[27].mxu0 }
 0x23b   : > { %4239 = vmatmul.mubr.msk.f32.gmra.mrb[64].mxu1 %vm342_vm4, %v6037_v55  ;;  %v450_v57 = vpop.permute.xlu1 %449  ;;  %v5427_v33 = vpop.f32.mrb[28].mxu0  ;;  %v6051_v55 = vld [vmem:[#allocation18_spill] sm:$0xff] }
 0x23c   : > { %4241 = vmatprep.mubr.msk.f32.mxu1 %vm342_vm4, %v6038_v13  ;;  %461 = vst.msk [vmem:[#allocation2 + $0x8] sm:$0xff] %vm459_vm7, %v450_v57  ;;  %v5429_v62 = vpop.permute.xlu0 %1031  ;;  %v1301_v63 = vpop.f32.mrb[29].mxu0 }
 0x23d   : > { %1894 = vrot.lane.b32.xlu1 %v6039_v31, %s4542_s17  ;;  %1432 = vrot.lane.b32.xlu0 %v1291_v58, %s4544_s19  ;;  %v6052_v31 = vld [vmem:[#allocation19_spill] sm:$0xff] }
 0x23f   : > { %4242 = vmatmul.mubr.msk.f32.gmra.mrb[66].mxu1 %vm342_vm4, %v6040_v59  ;;  %v454_v60 = vpop.permute.xlu1 %453  ;;  %v6053_v59 = vld [vmem:[#allocation20_spill] sm:$0xff] }
 0x240   : > { %4244 = vmatprep.mubr.msk.f32.mxu1 %vm342_vm4, %v4699_v14  ;;  %463 = vst.msk [vmem:[#allocation2 + $0x18] sm:$0xff] %vm459_vm7, %v454_v60  ;;  %v6043_v14 = vld [vmem:[#allocation24_spill] sm:$0xff]  ;;  %v976_v4 = vpop.permute.xlu0 %975 }
 0x241   : > { %1970 = vrot.lane.b32.xlu1 %v5192_v54, %s4546_s26  ;;  %1448 = vrot.lane.b32.xlu0 %v1301_v63, %s4545_s20  ;;  %v5439_v54 = vpop.f32.mrb[30].mxu0  ;;  %985 = vst.msk [vmem:[#allocation2 + $0x30] sm:$0xff] %vm480_vm8, %v976_v4  ;;  %v6054_v63 = vld [vmem:[#allocation21_spill] sm:$0xff] }
 0x242   : > { %v1311_v5 = vpop.f32.mrb[31].mxu0 }
 0x243   : > { %4245 = vmatmul.mubr.msk.f32.gmra.mrb[68].mxu1 %vm342_vm4, %v6041_v0  ;;  %v471_v1 = vpop.permute.xlu1 %470  ;;  %v5450_v47 = vpop.f32.mrb[32].mxu0 }
 0x244   : > { %4247 = vmatprep.mubr.msk.f32.mxu1 %vm342_vm4, %v6042_v2  ;;  %482 = vst.msk [vmem:[#allocation2 + $0x8] sm:$0xff] %vm480_vm8, %v471_v1  ;;  %v996_v48 = vpop.permute.xlu0 %995  ;;  %v1321_v49 = vpop.f32.mrb[33].mxu0  ;;  %v4471_v1 = vld [vmem:[%s4658_s10 + $0xe0] sm:$0xff] }
 0x245   : > { %1914 = vrot.lane.b32.xlu1 %v6043_v14, %s4543_s18  ;;  %1452 = vrot.lane.b32.xlu0 %v1311_v5, %s4545_s20  ;;  %1005 = vst.msk [vmem:[#allocation2 + $0x30] sm:$0xff] %vm501_vm9, %v996_v48  ;;  %v5461_v18 = vpop.f32.mrb[34].mxu0  ;;  %v4472_v14 = vld [vmem:[%s4658_s10 + $0xe8] sm:$0xff] }
 0x246   : > { %v1331_v43 = vpop.f32.mrb[35].mxu0 }
 0x247   : > { %4248 = vmatmul.mubr.msk.f32.gmra.mrb[70].mxu1 %vm342_vm4, %v4714_v17  ;;  %v475_v6 = vpop.permute.xlu1 %474  ;;  %v4185_v11 = vpop.f32.mrb[36].mxu0 }
 0x248   : > { %4250 = vmatprep.mubr.msk.f32.mxu1 %vm342_vm4, %v6044_v23  ;;  %484 = vst.msk [vmem:[#allocation2 + $0x18] sm:$0xff] %vm480_vm8, %v475_v6  ;;  %v1016_v10 = vpop.permute.xlu0 %1015  ;;  %v4473_v6 = vld [vmem:[%s4658_s10 + $0xf0] sm:$0xff] }
 0x249   : > { %1934 = vrot.lane.b32.xlu1 %v6045_v24, %s4544_s19  ;;  %1468 = vrot.lane.b32.xlu0 %v1321_v49, %s4546_s26  ;;  %1025 = vst.msk [vmem:[#allocation2 + $0x30] sm:$0xff] %vm522_vm10, %v1016_v10  ;;  %v4474_v24 = vld [vmem:[%s4658_s10 + $0xf8] sm:$0xff] }
 0x24a   : > { %2278 = vst.msk [vmem:[#allocation2 + $0x88] sm:$0xff] %vm342_vm4, %v4185_v11 }
 0x24b   : > { %4251 = vmatmul.mubr.msk.f32.gmra.mrb[72].mxu1 %vm342_vm4, %v4724_v19  ;;  %v492_v17 = vpop.permute.xlu1 %491 }
 0x24c   : > { %4253 = vmatprep.mubr.msk.f32.mxu1 %vm342_vm4, %v6046_v51  ;;  %503 = vst.msk [vmem:[#allocation2 + $0x8] sm:$0xff] %vm501_vm9, %v492_v17  ;;  %v1036_v35 = vpop.permute.xlu0 %1035 }
 0x24d   : > { %1954 = vrot.lane.b32.xlu1 %v6047_v16, %s4545_s20  ;;  %1472 = vrot.lane.b32.xlu0 %v1331_v43, %s4546_s26  ;;  %1045 = vst.msk [vmem:[#allocation2 + $0x30] sm:$0xff] %vm543_vm11, %v1036_v35 }
 0x24f   : > { %4254 = vmatmul.mubr.msk.f32.gmra.mrb[74].mxu1 %vm342_vm4, %v4734_v21  ;;  %v496_v19 = vpop.permute.xlu1 %495  ;;  %v2118_v21 = vpop.f32.mrb[37].mxu0 }
 0x250   : > { %4256 = vmatprep.mubr.msk.f32.mxu1 %vm342_vm4, %v6048_v46  ;;  %505 = vst.msk [vmem:[#allocation2 + $0x18] sm:$0xff] %vm501_vm9, %v496_v19  ;;  %v4188_v38 = vpop.f32.mrb[38].mxu0 }
 0x251   : > { %1974 = vrot.lane.b32.xlu1 %v5204_v56, %s4546_s26  ;;  %2277 = vst.msk [vmem:[#allocation2 + $0x80] sm:$0xff] %vm342_vm4, %v2118_v21  ;;  %v1849_v56 = vpop.permute.xlu0 %1848  ;;  %2280 = vst.msk [vmem:[#allocation2 + $0x98] sm:$0xff] %vm342_vm4, %v4188_v38  ;;  %v2128_v40 = vpop.f32.mrb[39].mxu0 }
 0x252   : > { %1860 = vst.msk [vmem:[#allocation2 + $0x60] sm:$0xff] %vm417_vm5, %v1849_v56 }
 0x253   : > { %4257 = vmatmul.mubr.msk.f32.gmra.mrb[76].mxu1 %vm342_vm4, %v4752_v26  ;;  %v513_v44 = vpop.permute.xlu1 %512  ;;  %2279 = vst.msk [vmem:[#allocation2 + $0x90] sm:$0xff] %vm342_vm4, %v2128_v40  ;;  %v4547_v40 = vmov 0.0|0.0  }
 0x254   : > { %4259 = vmatprep.mubr.msk.f32.mxu1 %vm342_vm4, %v6049_v41  ;;  %524 = vst.msk [vmem:[#allocation2 + $0x8] sm:$0xff] %vm522_vm10, %v513_v44  ;;  %v3363_v44 = vld [vmem:[#allocation2] sm:$0xff]  ;;  %4365 = vmatprep.subr.bf16.mxu1 %v4547_v40 }
 0x255   : > { %1350 = vrot.lane.b32.xlu1 %v5331_v61, %s4540_s15  ;;  %v5492_v61 = vpop.f32.mrb[40].mxu0  ;;  %v1869_v22 = vpop.permute.xlu0 %1868 }
 0x256   : > { %1880 = vst.msk [vmem:[#allocation2 + $0x60] sm:$0xff] %vm438_vm6, %v1869_v22  ;;  %v2138_v53 = vpop.f32.mrb[41].mxu0 }
 0x257   : > { %4260 = vmatmul.mubr.msk.f32.gmra.mrb[78].mxu1 %vm342_vm4, %v4765_v28  ;;  %v517_v26 = vpop.permute.xlu1 %516  ;;  %2285 = vrot.lane.b32.xlu0 %v2138_v53, %s4540_s15 }
 0x258   : > { %4262 = vmatprep.mubr.msk.f32.mxu1 %vm342_vm4, %v6050_v9  ;;  %526 = vst.msk [vmem:[#allocation2 + $0x18] sm:$0xff] %vm522_vm10, %v517_v26 }
 0x259   : > { %1354 = vrot.lane.b32.xlu1 %v5336_v37, %s4540_s15  ;;  %v1889_v57 = vpop.permute.xlu0 %1888 }
 0x25a   : > { %v5503_v37 = vpop.f32.mrb[42].mxu0  ;;  %1900 = vst.msk [vmem:[#allocation2 + $0x60] sm:$0xff] %vm459_vm7, %v1889_v57 }
 0x25b   : > { %4263 = vmatmul.mubr.msk.f32.gmra.mrb[80].mxu1 %vm342_vm4, %v4775_v30  ;;  %v534_v28 = vpop.permute.xlu1 %533  ;;  %v2148_v13 = vpop.f32.mrb[43].mxu0 }
 0x25c   : > { %4265 = vmatprep.mubr.msk.f32.mxu1 %vm342_vm4, %v6051_v55  ;;  %545 = vst.msk [vmem:[#allocation2 + $0x8] sm:$0xff] %vm543_vm11, %v534_v28  ;;  %2289 = vrot.lane.b32.xlu0 %v2148_v13, %s4540_s15 }
 0x25d   : > { %1370 = vrot.lane.b32.xlu1 %v5342_v3, %s4541_s16  ;;  %v1909_v15 = vpop.permute.xlu0 %1908 }
 0x25e   : > { %v5514_v3 = vpop.f32.mrb[44].mxu0  ;;  %1920 = vst.msk [vmem:[#allocation2 + $0x60] sm:$0xff] %vm480_vm8, %v1909_v15 }
 0x25f   : > { %4266 = vmatmul.mubr.msk.f32.gmra.mrb[82].mxu1 %vm342_vm4, %v4785_v32  ;;  %v538_v30 = vpop.permute.xlu1 %537  ;;  %v2158_v58 = vpop.f32.mrb[45].mxu0 }
 0x260   : > { %4268 = vmatprep.mubr.msk.f32.mxu1 %vm342_vm4, %v6052_v31  ;;  %547 = vst.msk [vmem:[#allocation2 + $0x18] sm:$0xff] %vm543_vm11, %v538_v30  ;;  %2305 = vrot.lane.b32.xlu0 %v2158_v58, %s4541_s16 }
 0x261   : > { %1374 = vrot.lane.b32.xlu1 %v5348_v7, %s4541_s16  ;;  %v1853_v7 = vpop.permute.xlu0 %1852 }
 0x262   : > { %1862 = vst.msk [vmem:[#allocation2 + $0x70] sm:$0xff] %vm417_vm5, %v1853_v7 }
 0x263   : > { %4269 = vmatmul.mubr.msk.f32.gmra.mrb[84].mxu1 %vm342_vm4, %v4795_v34  ;;  %v914_v32 = vpop.permute.xlu1 %913  ;;  %v5529_v34 = vpop.f32.mrb[46].mxu0  ;;  %v3364_v21 = vld [vmem:[#allocation2 + $0x8] sm:$0xff] }
 0x264   : > { %4271 = vmatprep.mubr.msk.f32.mxu1 %vm342_vm4, %v6053_v59  ;;  %924 = vst.msk [vmem:[#allocation2 + $0x28] sm:$0xff] %vm417_vm5, %v914_v32 }
 0x265   : > { %944 = vst.msk [vmem:[#allocation2 + $0x28] sm:$0xff] %vm438_vm6, %v5350_v8  ;;  %1390 = vrot.lane.b32.xlu1 %v5356_v25, %s4542_s17  ;;  %v2168_v8 = vpop.f32.mrb[47].mxu0  ;;  %v1929_v25 = vpop.permute.xlu0 %1928 }
 0x266   : > { %964 = vst.msk [vmem:[#allocation2 + $0x28] sm:$0xff] %vm459_vm7, %v5358_v29  ;;  %2309 = vrot.lane.b32.xlu0 %v2168_v8, %s4541_s16  ;;  %v4470_v29 = vld [vmem:[%s4658_s10 + $0xd8] sm:$0xff] }
 0x267   : > { %4272 = vmatmul.mubr.msk.f32.gmra.mrb[86].mxu1 %vm342_vm4, %v4805_v36  ;;  %v932_v60 = vpop.permute.xlu1 %931  ;;  %984 = vst.msk [vmem:[#allocation2 + $0x28] sm:$0xff] %vm480_vm8, %v5370_v52  ;;  %v5542_v36 = vpop.f32.mrb[48].mxu0  ;;  %v3366_v9 = vld [vmem:[#allocation2 + $0x18] sm:$0xff] }
 0x268   : > { %4274 = vmatprep.mubr.msk.f32.mxu1 %vm342_vm4, %v6054_v63  ;;  %943 = vst.msk [vmem:[#allocation2 + $0x20] sm:$0xff] %vm438_vm6, %v932_v60  ;;  %v2178_v0 = vpop.f32.mrb[49].mxu0  ;;  %v3369_v63 = vld [vmem:[#allocation2 + $0x30] sm:$0xff] }
 0x269   : > { %1394 = vrot.lane.b32.xlu1 %v5366_v50, %s4542_s17  ;;  %1940 = vst.msk [vmem:[#allocation2 + $0x60] sm:$0xff] %vm501_vm9, %v1929_v25  ;;  %v1873_v2 = vpop.permute.xlu0 %1872 }
 0x26a   : > { %2325 = vrot.lane.b32.xlu0 %v2178_v0, %s4542_s17  ;;  %v5553_v50 = vpop.f32.mrb[50].mxu0  ;;  %1882 = vst.msk [vmem:[#allocation2 + $0x70] sm:$0xff] %vm438_vm6, %v1873_v2 }
 0x26b   : > { %4275 = vmatmul.mubr.msk.f32.gmra.mrb[88].mxu1 %vm342_vm4, %v4470_v29  ;;  %v952_v52 = vpop.permute.xlu1 %951  ;;  %v2188_v5 = vpop.f32.mrb[51].mxu0 }
 0x26c   : > { %4277 = vmatprep.mubr.msk.f32.mxu1 %vm342_vm4, %v4471_v1  ;;  %963 = vst.msk [vmem:[#allocation2 + $0x20] sm:$0xff] %vm459_vm7, %v952_v52 }
 0x26d   : > { %1410 = vrot.lane.b32.xlu1 %v5384_v45, %s4543_s18  ;;  %v1949_v23 = vpop.permute.xlu0 %1948 }
 0x26e   : > { %2329 = vrot.lane.b32.xlu0 %v2188_v5, %s4542_s17  ;;  %v5568_v45 = vpop.f32.mrb[52].mxu0  ;;  %1960 = vst.msk [vmem:[#allocation2 + $0x60] sm:$0xff] %vm522_vm10, %v1949_v23 }
 0x26f   : > { %4278 = vmatmul.mubr.msk.f32.gmra.mrb[90].mxu1 %vm342_vm4, %v4472_v14  ;;  %v972_v4 = vpop.permute.xlu1 %971  ;;  %v2198_v49 = vpop.f32.mrb[53].mxu0 }
 0x270   : > { %4280 = vmatprep.mubr.msk.f32.mxu1 %vm342_vm4, %v4473_v6  ;;  %983 = vst.msk [vmem:[#allocation2 + $0x20] sm:$0xff] %vm480_vm8, %v972_v4 }
 0x271   : > { %1003 = vst.msk [vmem:[#allocation2 + $0x20] sm:$0xff] %vm501_vm9, %v5387_v12  ;;  %1414 = vrot.lane.b32.xlu1 %v5393_v27, %s4543_s18  ;;  %v1893_v27 = vpop.permute.xlu0 %1892 }
 0x272   : > { %1023 = vst.msk [vmem:[#allocation2 + $0x20] sm:$0xff] %vm522_vm10, %v5406_v20  ;;  %2345 = vrot.lane.b32.xlu0 %v2198_v49, %s4543_s18  ;;  %v5579_v12 = vpop.f32.mrb[54].mxu0 }
 0x273   : > { %4281 = vmatmul.mubr.msk.f32.gmra.mrb[92].mxu1 %vm342_vm4, %v4474_v24  ;;  %v918_v48 = vpop.permute.xlu1 %917  ;;  %1043 = vst.msk [vmem:[#allocation2 + $0x20] sm:$0xff] %vm543_vm11, %v5429_v62  ;;  %v2208_v17 = vpop.f32.mrb[55].mxu0 }
 0x274   : > { %926 = vst.msk [vmem:[#allocation2 + $0x38] sm:$0xff] %vm417_vm5, %v918_v48 }
 0x275   : > { %1430 = vrot.lane.b32.xlu1 %v5404_v42, %s4544_s19  ;;  %1902 = vst.msk [vmem:[#allocation2 + $0x70] sm:$0xff] %vm459_vm7, %v1893_v27  ;;  %v1969_v51 = vpop.permute.xlu0 %1968 }
 0x276   : > { %2349 = vrot.lane.b32.xlu0 %v2208_v17, %s4543_s18  ;;  %v5586_v62 = vpop.f32.mrb[56].mxu0  ;;  %1980 = vst.msk [vmem:[#allocation2 + $0x60] sm:$0xff] %vm543_vm11, %v1969_v51 }
 0x277   : > { %v994_v20 = vpop.permute.xlu1 %993  ;;  %v2218_v42 = vpop.f32.mrb[57].mxu0 }
 0x278   : > { %1004 = vst.msk [vmem:[#allocation2 + $0x28] sm:$0xff] %vm501_vm9, %v994_v20 }
 0x279   : > { %1434 = vrot.lane.b32.xlu1 %v5416_v39, %s4544_s19  ;;  %v1913_v43 = vpop.permute.xlu0 %1912 }
 0x27a   : > { %2365 = vrot.lane.b32.xlu0 %v2218_v42, %s4544_s19  ;;  %v5593_v10 = vpop.f32.mrb[58].mxu0  ;;  %1922 = vst.msk [vmem:[#allocation2 + $0x70] sm:$0xff] %vm480_vm8, %v1913_v43 }
 0x27b   : > { %v938_v16 = vpop.permute.xlu1 %937  ;;  %v2228_v39 = vpop.f32.mrb[59].mxu0 }
 0x27c   : > { %946 = vst.msk [vmem:[#allocation2 + $0x38] sm:$0xff] %vm438_vm6, %v938_v16 }
 0x27d   : > { %1450 = vrot.lane.b32.xlu1 %v5427_v33, %s4545_s20  ;;  %v1933_v35 = vpop.permute.xlu0 %1932 }
 0x27e   : > { %2369 = vrot.lane.b32.xlu0 %v2228_v39, %s4544_s19  ;;  %v5600_v46 = vpop.f32.mrb[60].mxu0  ;;  %1942 = vst.msk [vmem:[#allocation2 + $0x70] sm:$0xff] %vm501_vm9, %v1933_v35 }
 0x27f   : > { %v1014_v19 = vpop.permute.xlu1 %1013  ;;  %v2238_v33 = vpop.f32.mrb[61].mxu0 }
 0x280   : > { %1024 = vst.msk [vmem:[#allocation2 + $0x28] sm:$0xff] %vm522_vm10, %v1014_v19 }
 0x281   : > { %1454 = vrot.lane.b32.xlu1 %v5439_v54, %s4545_s20  ;;  %v1953_v56 = vpop.permute.xlu0 %1952  ;;  %v4366_v54 = vpack.c.bf16 %v3364_v21, %v3363_v44 }
 0x282   : > { %2385 = vrot.lane.b32.xlu0 %v2238_v33, %s4545_s20  ;;  %v5607_v41 = vpop.f32.mrb[62].mxu0  ;;  %1962 = vst.msk [vmem:[#allocation2 + $0x70] sm:$0xff] %vm522_vm10, %v1953_v56 }
 0x283   : > { %v958_v11 = vpop.permute.xlu1 %957  ;;  %v2248_v26 = vpop.f32.mrb[63].mxu0  ;;  %4367 = vmatpush1.bf16.msra.mxu1 %v4366_v54 }
 0x284   : > { %966 = vst.msk [vmem:[#allocation2 + $0x38] sm:$0xff] %vm459_vm7, %v958_v11  ;;  %4368 = vmatprep.subr.bf16.mxu1 %v4547_v40 }
 0x285   : > { %1470 = vrot.lane.b32.xlu1 %v5450_v47, %s4546_s26  ;;  %v3365_v47 = vld [vmem:[#allocation2 + $0x10] sm:$0xff]  ;;  %v1973_v28 = vpop.permute.xlu0 %1972 }
 0x286   : > { %2389 = vrot.lane.b32.xlu0 %v2248_v26, %s4545_s20  ;;  %v5616_v22 = vpop.f32.mrb[64].mxu0  ;;  %v4369_v53 = vpack.c.bf16 %v3366_v9, %v3365_v47  ;;  %1982 = vst.msk [vmem:[#allocation2 + $0x70] sm:$0xff] %vm543_vm11, %v1973_v28 }
 0x287   : > { %v1034_v38 = vpop.permute.xlu1 %1033  ;;  %v2258_v57 = vpop.f32.mrb[65].mxu0 }
 0x288   : > { %1044 = vst.msk [vmem:[#allocation2 + $0x28] sm:$0xff] %vm543_vm11, %v1034_v38  ;;  %4370 = vmatpush1.bf16.msra.mxu1 %v4369_v53 }
 0x289   : > { %1474 = vrot.lane.b32.xlu1 %v5461_v18, %s4546_s26  ;;  %4371 = vmatprep.subr.bf16.mxu1 %v4547_v40  ;;  %v3367_v18 = vld [vmem:[#allocation2 + $0x20] sm:$0xff]  ;;  %v1349_v13 = vpop.permute.xlu0 %1348 }
 0x28a   : > { %2405 = vrot.lane.b32.xlu0 %v2258_v57, %s4546_s26  ;;  %v5624_v30 = vpop.f32.mrb[66].mxu0  ;;  %1360 = vst.msk [vmem:[#allocation2 + $0x40] sm:$0xff] %vm417_vm5, %v1349_v13 }
 0x28b   : > { %v978_v55 = vpop.permute.xlu1 %977  ;;  %v2268_v15 = vpop.f32.mrb[67].mxu0 }
 0x28c   : > { %986 = vst.msk [vmem:[#allocation2 + $0x38] sm:$0xff] %vm480_vm8, %v978_v55 }
 0x28d   : > { %2287 = vrot.lane.b32.xlu1 %v5492_v61, %s4540_s15  ;;  %v1353_v61 = vpop.permute.xlu0 %1352 }
 0x28e   : > { %2409 = vrot.lane.b32.xlu0 %v2268_v15, %s4546_s26  ;;  %1362 = vst.msk [vmem:[#allocation2 + $0x50] sm:$0xff] %vm417_vm5, %v1353_v61 }
 0x28f   : > { %v998_v31 = vpop.permute.xlu1 %997  ;;  %v3368_v32 = vld [vmem:[#allocation2 + $0x28] sm:$0xff] }
 0x290   : > { %1006 = vst.msk [vmem:[#allocation2 + $0x38] sm:$0xff] %vm501_vm9, %v998_v31  ;;  %v4372_v58 = vpack.c.bf16 %v3368_v32, %v3367_v18 }
 0x291   : > { %2291 = vrot.lane.b32.xlu1 %v5503_v37, %s4540_s15  ;;  %v1369_v7 = vpop.permute.xlu0 %1368 }
 0x292   : > { %4373 = vmatpush1.bf16.msra.mxu1 %v4372_v58  ;;  %1380 = vst.msk [vmem:[#allocation2 + $0x40] sm:$0xff] %vm438_vm6, %v1369_v7 }
 0x293   : > { %v1018_v59 = vpop.permute.xlu1 %1017  ;;  %4374 = vmatprep.subr.bf16.mxu1 %v4547_v40 }
 0x294   : > { %1026 = vst.msk [vmem:[#allocation2 + $0x38] sm:$0xff] %vm522_vm10, %v1018_v59 }
 0x295   : > { %2307 = vrot.lane.b32.xlu1 %v5514_v3, %s4541_s16  ;;  %v1373_v37 = vpop.permute.xlu0 %1372 }
 0x296   : > { %1382 = vst.msk [vmem:[#allocation2 + $0x50] sm:$0xff] %vm438_vm6, %v1373_v37 }
 0x297   : > { %v1038_v60 = vpop.permute.xlu1 %1037 }
 0x298   : > { %1046 = vst.msk [vmem:[#allocation2 + $0x38] sm:$0xff] %vm543_vm11, %v1038_v60 }
 0x299   : > { %2311 = vrot.lane.b32.xlu1 %v5529_v34, %s4541_s16  ;;  %v1389_v3 = vpop.permute.xlu0 %1388 }
 0x29a   : > { %1400 = vst.msk [vmem:[#allocation2 + $0x40] sm:$0xff] %vm459_vm7, %v1389_v3  ;;  %v3375_v3 = vld [vmem:[#allocation2 + $0x60] sm:$0xff] }
 0x29b   : > { %v1851_v8 = vpop.permute.xlu1 %1850 }
 0x29c   : > { %1861 = vst.msk [vmem:[#allocation2 + $0x68] sm:$0xff] %vm417_vm5, %v1851_v8 }
 0x29d   : > { %2327 = vrot.lane.b32.xlu1 %v5542_v36, %s4542_s17  ;;  %v1393_v34 = vpop.permute.xlu0 %1392 }
 0x29e   : > { %1402 = vst.msk [vmem:[#allocation2 + $0x50] sm:$0xff] %vm459_vm7, %v1393_v34 }
 0x29f   : > { %v1871_v25 = vpop.permute.xlu1 %1870  ;;  %v3370_v29 = vld [vmem:[#allocation2 + $0x38] sm:$0xff] }
 0x2a0   : > { %1881 = vst.msk [vmem:[#allocation2 + $0x68] sm:$0xff] %vm438_vm6, %v1871_v25  ;;  %v4375_v52 = vpack.c.bf16 %v3370_v29, %v3369_v63 }
 0x2a1   : > { %2331 = vrot.lane.b32.xlu1 %v5553_v50, %s4542_s17 }
 0x2a2   : > { %4376 = vmatpush1.bf16.msra.mxu1 %v4375_v52  ;;  %v1409_v1 = vpop.permute.xlu0 %1408 }
 0x2a3   : > { %v1891_v0 = vpop.permute.xlu1 %1890  ;;  %4377 = vmatprep.subr.bf16.mxu1 %v4547_v40  ;;  %1420 = vst.msk [vmem:[#allocation2 + $0x40] sm:$0xff] %vm480_vm8, %v1409_v1  ;;  %v3377_v1 = vld [vmem:[#allocation2 + $0x70] sm:$0xff] }
 0x2a4   : > { %1901 = vst.msk [vmem:[#allocation2 + $0x68] sm:$0xff] %vm459_vm7, %v1891_v0 }
 0x2a5   : > { %2347 = vrot.lane.b32.xlu1 %v5568_v45, %s4543_s18 }
 0x2a7   : > { %v1911_v36 = vpop.permute.xlu1 %1910  ;;  %v1413_v2 = vpop.permute.xlu0 %1412 }
 0x2a8   : > { %1921 = vst.msk [vmem:[#allocation2 + $0x68] sm:$0xff] %vm480_vm8, %v1911_v36  ;;  %1422 = vst.msk [vmem:[#allocation2 + $0x50] sm:$0xff] %vm480_vm8, %v1413_v2 }
 0x2a9   : > { %2351 = vrot.lane.b32.xlu1 %v5579_v12, %s4543_s18 }
 0x2ab   : > { %v1855_v50 = vpop.permute.xlu1 %1854  ;;  %v1429_v4 = vpop.permute.xlu0 %1428 }
 0x2ac   : > { %1863 = vst.msk [vmem:[#allocation2 + $0x78] sm:$0xff] %vm417_vm5, %v1855_v50 }
 0x2ad   : > { %2367 = vrot.lane.b32.xlu1 %v5586_v62, %s4544_s19  ;;  %1440 = vst.msk [vmem:[#allocation2 + $0x40] sm:$0xff] %vm501_vm9, %v1429_v4 }
 0x2af   : > { %v1931_v14 = vpop.permute.xlu1 %1930  ;;  %v1433_v6 = vpop.permute.xlu0 %1432 }
 0x2b0   : > { %1941 = vst.msk [vmem:[#allocation2 + $0x68] sm:$0xff] %vm501_vm9, %v1931_v14  ;;  %1442 = vst.msk [vmem:[#allocation2 + $0x50] sm:$0xff] %vm501_vm9, %v1433_v6 }
 0x2b1   : > { %2371 = vrot.lane.b32.xlu1 %v5593_v10, %s4544_s19 }
 0x2b3   : > { %v1875_v5 = vpop.permute.xlu1 %1874  ;;  %v1449_v23 = vpop.permute.xlu0 %1448 }
 0x2b4   : > { %1883 = vst.msk [vmem:[#allocation2 + $0x78] sm:$0xff] %vm438_vm6, %v1875_v5 }
 0x2b5   : > { %2387 = vrot.lane.b32.xlu1 %v5600_v46, %s4545_s20  ;;  %1460 = vst.msk [vmem:[#allocation2 + $0x40] sm:$0xff] %vm522_vm10, %v1449_v23 }
 0x2b7   : > { %v1951_v45 = vpop.permute.xlu1 %1950  ;;  %v1453_v48 = vpop.permute.xlu0 %1452 }
 0x2b8   : > { %1961 = vst.msk [vmem:[#allocation2 + $0x68] sm:$0xff] %vm522_vm10, %v1951_v45  ;;  %1462 = vst.msk [vmem:[#allocation2 + $0x50] sm:$0xff] %vm522_vm10, %v1453_v48 }
 0x2b9   : > { %2391 = vrot.lane.b32.xlu1 %v5607_v41, %s4545_s20 }
 0x2bb   : > { %v1895_v24 = vpop.permute.xlu1 %1894  ;;  %v1469_v12 = vpop.permute.xlu0 %1468 }
 0x2bc   : > { %1903 = vst.msk [vmem:[#allocation2 + $0x78] sm:$0xff] %vm459_vm7, %v1895_v24 }
 0x2bd   : > { %2407 = vrot.lane.b32.xlu1 %v5616_v22, %s4546_s26  ;;  %1480 = vst.msk [vmem:[#allocation2 + $0x40] sm:$0xff] %vm543_vm11, %v1469_v12 }
 0x2bf   : > { %v1971_v49 = vpop.permute.xlu1 %1970  ;;  %v1473_v20 = vpop.permute.xlu0 %1472 }
 0x2c0   : > { %1981 = vst.msk [vmem:[#allocation2 + $0x68] sm:$0xff] %vm543_vm11, %v1971_v49  ;;  %1482 = vst.msk [vmem:[#allocation2 + $0x50] sm:$0xff] %vm543_vm11, %v1473_v20 }
 0x2c1   : > { %2411 = vrot.lane.b32.xlu1 %v5624_v30, %s4546_s26 }
 0x2c3   : > { %v1915_v27 = vpop.permute.xlu1 %1914 }
 0x2c4   : > { %1923 = vst.msk [vmem:[#allocation2 + $0x78] sm:$0xff] %vm480_vm8, %v1915_v27  ;;  %v3371_v15 = vld [vmem:[#allocation2 + $0x40] sm:$0xff] }
 0x2c7   : > { %v1935_v17 = vpop.permute.xlu1 %1934  ;;  %v3373_v60 = vld [vmem:[#allocation2 + $0x50] sm:$0xff]  ;;  %v3376_v25 = vld [vmem:[#allocation2 + $0x68] sm:$0xff] }
 0x2c8   : > { %1943 = vst.msk [vmem:[#allocation2 + $0x78] sm:$0xff] %vm501_vm9, %v1935_v17  ;;  %v4384_v0 = vpack.c.bf16 %v3376_v25, %v3375_v3 }
 0x2c9   : > { %v2286_v51 = vpop.permute.xlu0 %2285 }
 0x2ca   : > { %2297 = vst.msk [vmem:[#allocation2 + $0x80] sm:$0xff] %vm417_vm5, %v2286_v51 }
 0x2cb   : > { %v1955_v62 = vpop.permute.xlu1 %1954 }
 0x2cc   : > { %1963 = vst.msk [vmem:[#allocation2 + $0x78] sm:$0xff] %vm522_vm10, %v1955_v62 }
 0x2ce   : > { %v2290_v42 = vpop.permute.xlu0 %2289 }
 0x2cf   : > { %v1975_v16 = vpop.permute.xlu1 %1974  ;;  %2299 = vst.msk [vmem:[#allocation2 + $0x90] sm:$0xff] %vm417_vm5, %v2290_v42 }
 0x2d0   : > { %1983 = vst.msk [vmem:[#allocation2 + $0x78] sm:$0xff] %vm543_vm11, %v1975_v16 }
 0x2d2   : > { %v2306_v43 = vpop.permute.xlu0 %2305 }
 0x2d3   : > { %v1351_v10 = vpop.permute.xlu1 %1350  ;;  %2317 = vst.msk [vmem:[#allocation2 + $0x80] sm:$0xff] %vm438_vm6, %v2306_v43 }
 0x2d4   : > { %1361 = vst.msk [vmem:[#allocation2 + $0x48] sm:$0xff] %vm417_vm5, %v1351_v10 }
 0x2d7   : > { %v1355_v19 = vpop.permute.xlu1 %1354  ;;  %v3378_v50 = vld [vmem:[#allocation2 + $0x78] sm:$0xff] }
 0x2d8   : > { %1363 = vst.msk [vmem:[#allocation2 + $0x58] sm:$0xff] %vm417_vm5, %v1355_v19  ;;  %v2310_v39 = vpop.permute.xlu0 %2309  ;;  %v4387_v4 = vpack.c.bf16 %v3378_v50, %v3377_v1 }
 0x2d9   : > { %2319 = vst.msk [vmem:[#allocation2 + $0x90] sm:$0xff] %vm438_vm6, %v2310_v39 }
 0x2db   : > { %v1371_v46 = vpop.permute.xlu1 %1370 }
 0x2dc   : > { %1381 = vst.msk [vmem:[#allocation2 + $0x48] sm:$0xff] %vm438_vm6, %v1371_v46  ;;  %v2326_v35 = vpop.permute.xlu0 %2325 }
 0x2dd   : > { %2337 = vst.msk [vmem:[#allocation2 + $0x80] sm:$0xff] %vm459_vm7, %v2326_v35 }
 0x2df   : > { %v1375_v11 = vpop.permute.xlu1 %1374 }
 0x2e0   : > { %1383 = vst.msk [vmem:[#allocation2 + $0x58] sm:$0xff] %vm438_vm6, %v1375_v11  ;;  %v2330_v33 = vpop.permute.xlu0 %2329 }
 0x2e1   : > { %2339 = vst.msk [vmem:[#allocation2 + $0x90] sm:$0xff] %vm459_vm7, %v2330_v33 }
 0x2e3   : > { %v1391_v44 = vpop.permute.xlu1 %1390 }
 0x2e4   : > { %1401 = vst.msk [vmem:[#allocation2 + $0x48] sm:$0xff] %vm459_vm7, %v1391_v44  ;;  %v2346_v21 = vpop.permute.xlu0 %2345 }
 0x2e5   : > { %2357 = vst.msk [vmem:[#allocation2 + $0x80] sm:$0xff] %vm480_vm8, %v2346_v21 }
 0x2e7   : > { %v1395_v41 = vpop.permute.xlu1 %1394 }
 0x2e8   : > { %1403 = vst.msk [vmem:[#allocation2 + $0x58] sm:$0xff] %vm459_vm7, %v1395_v41  ;;  %v2350_v56 = vpop.permute.xlu0 %2349 }
 0x2e9   : > { %2359 = vst.msk [vmem:[#allocation2 + $0x90] sm:$0xff] %vm480_vm8, %v2350_v56 }
 0x2eb   : > { %v1411_v54 = vpop.permute.xlu1 %1410 }
 0x2ec   : > { %1421 = vst.msk [vmem:[#allocation2 + $0x48] sm:$0xff] %vm480_vm8, %v1411_v54  ;;  %v2366_v38 = vpop.permute.xlu0 %2365 }
 0x2ed   : > { %2377 = vst.msk [vmem:[#allocation2 + $0x80] sm:$0xff] %vm501_vm9, %v2366_v38 }
 0x2ef   : > { %v1415_v26 = vpop.permute.xlu1 %1414 }
 0x2f0   : > { %1423 = vst.msk [vmem:[#allocation2 + $0x58] sm:$0xff] %vm480_vm8, %v1415_v26  ;;  %v2370_v47 = vpop.permute.xlu0 %2369 }
 0x2f1   : > { %2379 = vst.msk [vmem:[#allocation2 + $0x90] sm:$0xff] %vm501_vm9, %v2370_v47 }
 0x2f3   : > { %v1431_v9 = vpop.permute.xlu1 %1430 }
 0x2f4   : > { %1441 = vst.msk [vmem:[#allocation2 + $0x48] sm:$0xff] %vm501_vm9, %v1431_v9  ;;  %v2386_v22 = vpop.permute.xlu0 %2385 }
 0x2f5   : > { %2397 = vst.msk [vmem:[#allocation2 + $0x80] sm:$0xff] %vm522_vm10, %v2386_v22 }
 0x2f7   : > { %v1435_v28 = vpop.permute.xlu1 %1434 }
 0x2f8   : > { %1443 = vst.msk [vmem:[#allocation2 + $0x58] sm:$0xff] %vm501_vm9, %v1435_v28  ;;  %v2390_v53 = vpop.permute.xlu0 %2389 }
 0x2f9   : > { %2399 = vst.msk [vmem:[#allocation2 + $0x90] sm:$0xff] %vm522_vm10, %v2390_v53 }
 0x2fb   : > { %v1451_v55 = vpop.permute.xlu1 %1450 }
 0x2fc   : > { %1461 = vst.msk [vmem:[#allocation2 + $0x48] sm:$0xff] %vm522_vm10, %v1451_v55  ;;  %v2406_v57 = vpop.permute.xlu0 %2405 }
 0x2fd   : > { %2417 = vst.msk [vmem:[#allocation2 + $0x80] sm:$0xff] %vm543_vm11, %v2406_v57 }
 0x2ff   : > { %v1455_v18 = vpop.permute.xlu1 %1454 }
 0x300   : > { %1463 = vst.msk [vmem:[#allocation2 + $0x58] sm:$0xff] %vm522_vm10, %v1455_v18  ;;  %v2410_v30 = vpop.permute.xlu0 %2409 }
 0x301   : > { %2419 = vst.msk [vmem:[#allocation2 + $0x90] sm:$0xff] %vm543_vm11, %v2410_v30 }
 0x303   : > { %v1471_v13 = vpop.permute.xlu1 %1470 }
 0x304   : > { %1481 = vst.msk [vmem:[#allocation2 + $0x48] sm:$0xff] %vm543_vm11, %v1471_v13  ;;  %v3379_v22 = vld [vmem:[#allocation2 + $0x80] sm:$0xff] }
 0x307   : > { %v1475_v31 = vpop.permute.xlu1 %1474 }
 0x308   : > { %1483 = vst.msk [vmem:[#allocation2 + $0x58] sm:$0xff] %vm543_vm11, %v1475_v31  ;;  %v3381_v18 = vld [vmem:[#allocation2 + $0x90] sm:$0xff] }
 0x30a   : > { %v4237_v32 = vpop.f32.mrb[62].mxu1 }
 0x30b   : > { %2775 = vst.msk [vmem:[#allocation2 + $0xa8] sm:$0xff] %vm342_vm4, %v4237_v32  ;;  %v2615_v58 = vpop.f32.mrb[63].mxu1  ;;  %v3372_v61 = vld [vmem:[#allocation2 + $0x48] sm:$0xff]  ;;  %v2288_v59 = vpop.permute.xlu1 %2287 }
 0x30c   : > { %2774 = vst.msk [vmem:[#allocation2 + $0xa0] sm:$0xff] %vm342_vm4, %v2615_v58  ;;  %4287 = vmatprep.mubr.msk.f32.mxu0 %vm342_vm4, %v2615_v58  ;;  %v4378_v7 = vpack.c.bf16 %v3372_v61, %v3371_v15 }
 0x30d   : > { %2298 = vst.msk [vmem:[#allocation2 + $0x88] sm:$0xff] %vm417_vm5, %v2288_v59  ;;  %4288 = vmatmul.mubr.msk.f32.vlgmr.msra.gmra.mrb[68].mxu0 %vm342_vm4, %v4237_v32 }
 0x30e   : > { %v4240_v37 = vpop.f32.mrb[64].mxu1  ;;  %4379 = vmatpush1.bf16.msra.mxu1 %v4378_v7 }
 0x30f   : > { %2777 = vst.msk [vmem:[#allocation2 + $0xb8] sm:$0xff] %vm342_vm4, %v4240_v37  ;;  %v2625_v8 = vpop.f32.mrb[65].mxu1  ;;  %4380 = vmatprep.subr.bf16.mxu1 %v4547_v40  ;;  %v3374_v63 = vld [vmem:[#allocation2 + $0x58] sm:$0xff]  ;;  %v2292_v29 = vpop.permute.xlu1 %2291 }
 0x310   : > { %2776 = vst.msk [vmem:[#allocation2 + $0xb0] sm:$0xff] %vm342_vm4, %v2625_v8  ;;  %4290 = vmatprep.mubr.msk.f32.mxu0 %vm342_vm4, %v2625_v8  ;;  %v4381_v52 = vpack.c.bf16 %v3374_v63, %v3373_v60 }
 0x311   : > { %2300 = vst.msk [vmem:[#allocation2 + $0x98] sm:$0xff] %vm417_vm5, %v2292_v29  ;;  %4291 = vmatmul.mubr.msk.f32.gmra.mrb[70].mxu0 %vm342_vm4, %v4240_v37 }
 0x312   : > { %v4243_v34 = vpop.f32.mrb[66].mxu1  ;;  %4382 = vmatpush1.bf16.msra.mxu1 %v4381_v52 }
 0x313   : > { %v2635_v36 = vpop.f32.mrb[67].mxu1  ;;  %2784 = vrot.lane.b32.xlu1 %v4243_v34, %s4540_s15  ;;  %4383 = vmatprep.subr.bf16.mxu1 %v4547_v40  ;;  %v2308_v2 = vpop.permute.xlu1 %2307 }
 0x314   : > { %4293 = vmatprep.mubr.msk.f32.mxu0 %vm342_vm4, %v2635_v36  ;;  %2782 = vrot.lane.b32.xlu0 %v2635_v36, %s4540_s15  ;;  %2318 = vst.msk [vmem:[#allocation2 + $0x88] sm:$0xff] %vm438_vm6, %v2308_v2 }
 0x315   : > { %4294 = vmatmul.mubr.msk.f32.gmra.mrb[72].mxu0 %vm342_vm4, %v4243_v34 }
 0x316   : > { %v4246_v14 = vpop.f32.mrb[68].mxu1  ;;  %4385 = vmatpush1.bf16.msra.mxu1 %v4384_v0 }
 0x317   : > { %v2645_v5 = vpop.f32.mrb[69].mxu1  ;;  %2788 = vrot.lane.b32.xlu1 %v4246_v14, %s4540_s15  ;;  %4386 = vmatprep.subr.bf16.mxu1 %v4547_v40  ;;  %v2312_v6 = vpop.permute.xlu1 %2311 }
 0x318   : > { %4296 = vmatprep.mubr.msk.f32.mxu0 %vm342_vm4, %v2645_v5  ;;  %2786 = vrot.lane.b32.xlu0 %v2645_v5, %s4540_s15  ;;  %2320 = vst.msk [vmem:[#allocation2 + $0x98] sm:$0xff] %vm438_vm6, %v2312_v6 }
 0x319   : > { %4297 = vmatmul.mubr.msk.f32.gmra.mrb[74].mxu0 %vm342_vm4, %v4246_v14 }
 0x31a   : > { %v4249_v45 = vpop.f32.mrb[70].mxu1  ;;  %4388 = vmatpush1.bf16.msra.mxu1 %v4387_v4 }
 0x31b   : > { %v2655_v23 = vpop.f32.mrb[71].mxu1  ;;  %2804 = vrot.lane.b32.xlu1 %v4249_v45, %s4541_s16  ;;  %v2328_v24 = vpop.permute.xlu1 %2327  ;;  %4389 = vmatprep.subr.bf16.mxu1 %v4547_v40 }
 0x31c   : > { %4299 = vmatprep.mubr.msk.f32.mxu0 %vm342_vm4, %v2655_v23  ;;  %2802 = vrot.lane.b32.xlu0 %v2655_v23, %s4541_s16  ;;  %2338 = vst.msk [vmem:[#allocation2 + $0x88] sm:$0xff] %vm459_vm7, %v2328_v24 }
 0x31d   : > { %4300 = vmatmul.mubr.msk.f32.gmra.mrb[76].mxu0 %vm342_vm4, %v4249_v45 }
 0x31e   : > { %v4252_v48 = vpop.f32.mrb[72].mxu1 }
 0x31f   : > { %v2665_v49 = vpop.f32.mrb[73].mxu1  ;;  %2808 = vrot.lane.b32.xlu1 %v4252_v48, %s4541_s16  ;;  %v2332_v12 = vpop.permute.xlu1 %2331 }
 0x320   : > { %4302 = vmatprep.mubr.msk.f32.mxu0 %vm342_vm4, %v2665_v49  ;;  %2806 = vrot.lane.b32.xlu0 %v2665_v49, %s4541_s16  ;;  %2340 = vst.msk [vmem:[#allocation2 + $0x98] sm:$0xff] %vm459_vm7, %v2332_v12 }
 0x321   : > { %4303 = vmatmul.mubr.msk.f32.gmra.mrb[78].mxu0 %vm342_vm4, %v4252_v48 }
 0x322   : > { %v4255_v27 = vpop.f32.mrb[74].mxu1 }
 0x323   : > { %v2675_v20 = vpop.f32.mrb[75].mxu1  ;;  %2824 = vrot.lane.b32.xlu1 %v4255_v27, %s4542_s17  ;;  %v2348_v17 = vpop.permute.xlu1 %2347 }
 0x324   : > { %4305 = vmatprep.mubr.msk.f32.mxu0 %vm342_vm4, %v2675_v20  ;;  %2822 = vrot.lane.b32.xlu0 %v2675_v20, %s4542_s17  ;;  %2358 = vst.msk [vmem:[#allocation2 + $0x88] sm:$0xff] %vm480_vm8, %v2348_v17 }
 0x325   : > { %4306 = vmatmul.mubr.msk.f32.gmra.mrb[80].mxu0 %vm342_vm4, %v4255_v27 }
 0x326   : > { %v4258_v62 = vpop.f32.mrb[76].mxu1 }
 0x327   : > { %v2685_v51 = vpop.f32.mrb[77].mxu1  ;;  %2828 = vrot.lane.b32.xlu1 %v4258_v62, %s4542_s17  ;;  %v2352_v16 = vpop.permute.xlu1 %2351 }
 0x328   : > { %4308 = vmatprep.mubr.msk.f32.mxu0 %vm342_vm4, %v2685_v51  ;;  %2826 = vrot.lane.b32.xlu0 %v2685_v51, %s4542_s17  ;;  %2360 = vst.msk [vmem:[#allocation2 + $0x98] sm:$0xff] %vm480_vm8, %v2352_v16 }
 0x329   : > { %4309 = vmatmul.mubr.msk.f32.gmra.mrb[82].mxu0 %vm342_vm4, %v4258_v62 }
 0x32a   : > { %v4261_v42 = vpop.f32.mrb[78].mxu1 }
 0x32b   : > { %v2695_v10 = vpop.f32.mrb[79].mxu1  ;;  %2844 = vrot.lane.b32.xlu1 %v4261_v42, %s4543_s18  ;;  %v2368_v43 = vpop.permute.xlu1 %2367 }
 0x32c   : > { %4311 = vmatprep.mubr.msk.f32.mxu0 %vm342_vm4, %v2695_v10  ;;  %2842 = vrot.lane.b32.xlu0 %v2695_v10, %s4543_s18  ;;  %2378 = vst.msk [vmem:[#allocation2 + $0x88] sm:$0xff] %vm501_vm9, %v2368_v43 }
 0x32d   : > { %4312 = vmatmul.mubr.msk.f32.gmra.mrb[84].mxu0 %vm342_vm4, %v4261_v42 }
 0x32e   : > { %v4264_v19 = vpop.f32.mrb[80].mxu1 }
 0x32f   : > { %v2705_v39 = vpop.f32.mrb[81].mxu1  ;;  %2848 = vrot.lane.b32.xlu1 %v4264_v19, %s4543_s18  ;;  %v2372_v46 = vpop.permute.xlu1 %2371 }
 0x330   : > { %4314 = vmatprep.mubr.msk.f32.mxu0 %vm342_vm4, %v2705_v39  ;;  %2846 = vrot.lane.b32.xlu0 %v2705_v39, %s4543_s18  ;;  %2380 = vst.msk [vmem:[#allocation2 + $0x98] sm:$0xff] %vm501_vm9, %v2372_v46 }
 0x331   : > { %4315 = vmatmul.mubr.msk.f32.gmra.mrb[86].mxu0 %vm342_vm4, %v4264_v19 }
 0x332   : > { %v4267_v35 = vpop.f32.mrb[82].mxu1 }
 0x333   : > { %v2715_v11 = vpop.f32.mrb[83].mxu1  ;;  %2864 = vrot.lane.b32.xlu1 %v4267_v35, %s4544_s19  ;;  %v2388_v33 = vpop.permute.xlu1 %2387 }
 0x334   : > { %4317 = vmatprep.mubr.msk.f32.mxu0 %vm342_vm4, %v2715_v11  ;;  %2862 = vrot.lane.b32.xlu0 %v2715_v11, %s4544_s19  ;;  %2398 = vst.msk [vmem:[#allocation2 + $0x88] sm:$0xff] %vm522_vm10, %v2388_v33 }
 0x335   : > { %4318 = vmatmul.mubr.msk.f32.gmra.mrb[88].mxu0 %vm342_vm4, %v4267_v35 }
 0x336   : > { %v4270_v44 = vpop.f32.mrb[84].mxu1 }
 0x337   : > { %v2725_v21 = vpop.f32.mrb[85].mxu1  ;;  %2868 = vrot.lane.b32.xlu1 %v4270_v44, %s4544_s19  ;;  %v2392_v41 = vpop.permute.xlu1 %2391 }
 0x338   : > { %4320 = vmatprep.mubr.msk.f32.mxu0 %vm342_vm4, %v2725_v21  ;;  %2866 = vrot.lane.b32.xlu0 %v2725_v21, %s4544_s19  ;;  %2400 = vst.msk [vmem:[#allocation2 + $0x98] sm:$0xff] %vm522_vm10, %v2392_v41 }
 0x339   : > { %4321 = vmatmul.mubr.msk.f32.gmra.mrb[90].mxu0 %vm342_vm4, %v4270_v44 }
 0x33a   : > { %v4273_v56 = vpop.f32.mrb[86].mxu1 }
 0x33b   : > { %v2735_v54 = vpop.f32.mrb[87].mxu1  ;;  %2884 = vrot.lane.b32.xlu1 %v4273_v56, %s4545_s20  ;;  %v2408_v38 = vpop.permute.xlu1 %2407 }
 0x33c   : > { %4323 = vmatprep.mubr.msk.f32.mxu0 %vm342_vm4, %v2735_v54  ;;  %2882 = vrot.lane.b32.xlu0 %v2735_v54, %s4545_s20  ;;  %2418 = vst.msk [vmem:[#allocation2 + $0x88] sm:$0xff] %vm543_vm11, %v2408_v38 }
 0x33d   : > { %4324 = vmatmul.mubr.msk.f32.gmra.mrb[92].mxu0 %vm342_vm4, %v4273_v56 }
 0x33e   : > { %v4276_v26 = vpop.f32.mrb[88].mxu1 }
 0x33f   : > { %v2745_v47 = vpop.f32.mrb[89].mxu1  ;;  %2888 = vrot.lane.b32.xlu1 %v4276_v26, %s4545_s20  ;;  %v2412_v9 = vpop.permute.xlu1 %2411 }
 0x340   : > { %4326 = vmatprep.mubr.msk.f32.mxu0 %vm342_vm4, %v2745_v47  ;;  %2886 = vrot.lane.b32.xlu0 %v2745_v47, %s4545_s20  ;;  %2420 = vst.msk [vmem:[#allocation2 + $0x98] sm:$0xff] %vm543_vm11, %v2412_v9 }
 0x341   : > { %4327 = vmatmul.mubr.msk.f32.gmra.mrb[94].mxu0 %vm342_vm4, %v4276_v26 }
 0x342   : > { %v4279_v28 = vpop.f32.mrb[90].mxu1 }
 0x343   : > { %v2755_v53 = vpop.f32.mrb[91].mxu1  ;;  %2904 = vrot.lane.b32.xlu1 %v4279_v28, %s4546_s26  ;;  %v3380_v55 = vld [vmem:[#allocation2 + $0x88] sm:$0xff] }
 0x344   : > { %4329 = vmatprep.mubr.msk.f32.mxu0 %vm342_vm4, %v2755_v53  ;;  %2902 = vrot.lane.b32.xlu0 %v2755_v53, %s4546_s26  ;;  %v4390_v57 = vpack.c.bf16 %v3380_v55, %v3379_v22 }
 0x345   : > { %4330 = vmatmul.mubr.msk.f32.gmra.mrb[96].mxu0 %vm342_vm4, %v4279_v28 }
 0x346   : > { %v4282_v30 = vpop.f32.mrb[92].mxu1  ;;  %4391 = vmatpush1.bf16.msra.mxu1 %v4390_v57 }
 0x347   : > { %v2765_v13 = vpop.f32.mrb[93].mxu1  ;;  %2908 = vrot.lane.b32.xlu1 %v4282_v30, %s4546_s26  ;;  %4392 = vmatprep.subr.bf16.mxu1 %v4547_v40  ;;  %v3382_v31 = vld [vmem:[#allocation2 + $0x98] sm:$0xff] }
 0x348   : > { %4332 = vmatprep.mubr.msk.f32.mxu0 %vm342_vm4, %v2765_v13  ;;  %2906 = vrot.lane.b32.xlu0 %v2765_v13, %s4546_s26  ;;  %v4393_v15 = vpack.c.bf16 %v3382_v31, %v3381_v18 }
 0x349   : > { %4333 = vmatmul.mubr.msk.f32.gmra.mrb[98].mxu0 %vm342_vm4, %v4282_v30 }
 0x34a   : > { %4394 = vmatpush1.bf16.msra.mxu1 %v4393_v15 }
 0x34b   : > { %4395 = vmatprep.subr.bf16.mxu1 %v4547_v40 }
 0x385   : > { %v2785_v32 = vpop.permute.xlu1 %2784 }
 0x386   : > { %2795 = vst.msk [vmem:[#allocation2 + $0xa8] sm:$0xff] %vm417_vm5, %v2785_v32  ;;  %v2783_v58 = vpop.permute.xlu0 %2782 }
 0x387   : > { %2794 = vst.msk [vmem:[#allocation2 + $0xa0] sm:$0xff] %vm417_vm5, %v2783_v58  ;;  %v3356_v58 = vld [vmem:[%s5983_s4 + $0x8] sm:$0xff] }
 0x388   : > { %3797 = vmatprep.mubr.msk.f32.mxu1 %vm3415_vm12, %v3356_v58 }
 0x389   : > { %v2789_v61 = vpop.permute.xlu1 %2788 }
 0x38a   : > { %2797 = vst.msk [vmem:[#allocation2 + $0xb8] sm:$0xff] %vm417_vm5, %v2789_v61  ;;  %v2787_v59 = vpop.permute.xlu0 %2786 }
 0x38b   : > { %2796 = vst.msk [vmem:[#allocation2 + $0xb0] sm:$0xff] %vm417_vm5, %v2787_v59 }
 0x38d   : > { %v2805_v7 = vpop.permute.xlu1 %2804 }
 0x38e   : > { %2815 = vst.msk [vmem:[#allocation2 + $0xa8] sm:$0xff] %vm438_vm6, %v2805_v7  ;;  %v2803_v60 = vpop.permute.xlu0 %2802  ;;  %v3391_v7 = vld [vmem:[%s5984_s5] sm:$0xff] }
 0x38f   : > { %2814 = vst.msk [vmem:[#allocation2 + $0xa0] sm:$0xff] %vm438_vm6, %v2803_v60  ;;  %v3392_v60 = vld [vmem:[%s5984_s5 + $0x8] sm:$0xff] }
 0x391   : > { %v2809_v37 = vpop.permute.xlu1 %2808 }
 0x392   : > { %2817 = vst.msk [vmem:[#allocation2 + $0xb8] sm:$0xff] %vm438_vm6, %v2809_v37  ;;  %v2807_v8 = vpop.permute.xlu0 %2806  ;;  %v4548_v37 = vmov 0  }
 0x393   : > { %2816 = vst.msk [vmem:[#allocation2 + $0xb0] sm:$0xff] %vm438_vm6, %v2807_v8  ;;  %4460 = vset.pattern.permute.xlu0 %v4548_v37  ;;  %4461 = vset.pattern.permute.xlu1 %v4548_v37  ;;  %v3393_v8 = vld [vmem:[%s5984_s5 + $0x10] sm:$0xff] }
 0x395   : > { %v2825_v63 = vpop.permute.xlu1 %2824 }
 0x396   : > { %2835 = vst.msk [vmem:[#allocation2 + $0xa8] sm:$0xff] %vm459_vm7, %v2825_v63  ;;  %v2823_v3 = vpop.permute.xlu0 %2822  ;;  %v3394_v63 = vld [vmem:[%s5984_s5 + $0x18] sm:$0xff] }
 0x397   : > { %2834 = vst.msk [vmem:[#allocation2 + $0xa0] sm:$0xff] %vm459_vm7, %v2823_v3 }
 0x399   : > { %v2829_v25 = vpop.permute.xlu1 %2828 }
 0x39a   : > { %2837 = vst.msk [vmem:[#allocation2 + $0xb8] sm:$0xff] %vm459_vm7, %v2829_v25  ;;  %v2827_v29 = vpop.permute.xlu0 %2826 }
 0x39b   : > { %2836 = vst.msk [vmem:[#allocation2 + $0xb0] sm:$0xff] %vm459_vm7, %v2827_v29 }
 0x39d   : > { %v2845_v52 = vpop.permute.xlu1 %2844 }
 0x39e   : > { %2855 = vst.msk [vmem:[#allocation2 + $0xa8] sm:$0xff] %vm480_vm8, %v2845_v52  ;;  %v2843_v34 = vpop.permute.xlu0 %2842 }
 0x39f   : > { %2854 = vst.msk [vmem:[#allocation2 + $0xa0] sm:$0xff] %vm480_vm8, %v2843_v34 }
 0x3a1   : > { %v2849_v0 = vpop.permute.xlu1 %2848 }
 0x3a2   : > { %2857 = vst.msk [vmem:[#allocation2 + $0xb8] sm:$0xff] %vm480_vm8, %v2849_v0  ;;  %v2847_v36 = vpop.permute.xlu0 %2846 }
 0x3a3   : > { %2856 = vst.msk [vmem:[#allocation2 + $0xb0] sm:$0xff] %vm480_vm8, %v2847_v36 }
 0x3a5   : > { %v2865_v1 = vpop.permute.xlu1 %2864 }
 0x3a6   : > { %2875 = vst.msk [vmem:[#allocation2 + $0xa8] sm:$0xff] %vm501_vm9, %v2865_v1  ;;  %v2863_v50 = vpop.permute.xlu0 %2862 }
 0x3a7   : > { %2874 = vst.msk [vmem:[#allocation2 + $0xa0] sm:$0xff] %vm501_vm9, %v2863_v50 }
 0x3a9   : > { %v2869_v2 = vpop.permute.xlu1 %2868 }
 0x3aa   : > { %2877 = vst.msk [vmem:[#allocation2 + $0xb8] sm:$0xff] %vm501_vm9, %v2869_v2  ;;  %v2867_v14 = vpop.permute.xlu0 %2866 }
 0x3ab   : > { %2876 = vst.msk [vmem:[#allocation2 + $0xb0] sm:$0xff] %vm501_vm9, %v2867_v14 }
 0x3ad   : > { %v2885_v4 = vpop.permute.xlu1 %2884 }
 0x3ae   : > { %2895 = vst.msk [vmem:[#allocation2 + $0xa8] sm:$0xff] %vm522_vm10, %v2885_v4  ;;  %v2883_v5 = vpop.permute.xlu0 %2882 }
 0x3af   : > { %2894 = vst.msk [vmem:[#allocation2 + $0xa0] sm:$0xff] %vm522_vm10, %v2883_v5 }
 0x3b1   : > { %v2889_v6 = vpop.permute.xlu1 %2888 }
 0x3b2   : > { %2897 = vst.msk [vmem:[#allocation2 + $0xb8] sm:$0xff] %vm522_vm10, %v2889_v6  ;;  %v2887_v45 = vpop.permute.xlu0 %2886 }
 0x3b3   : > { %2896 = vst.msk [vmem:[#allocation2 + $0xb0] sm:$0xff] %vm522_vm10, %v2887_v45 }
 0x3b5   : > { %v2905_v23 = vpop.permute.xlu1 %2904 }
 0x3b6   : > { %2915 = vst.msk [vmem:[#allocation2 + $0xa8] sm:$0xff] %vm543_vm11, %v2905_v23  ;;  %v2903_v24 = vpop.permute.xlu0 %2902 }
 0x3b7   : > { %2914 = vst.msk [vmem:[#allocation2 + $0xa0] sm:$0xff] %vm543_vm11, %v2903_v24 }
 0x3b9   : > { %v2909_v48 = vpop.permute.xlu1 %2908 }
 0x3ba   : > { %2917 = vst.msk [vmem:[#allocation2 + $0xb8] sm:$0xff] %vm543_vm11, %v2909_v48  ;;  %v2907_v49 = vpop.permute.xlu0 %2906 }
 0x3bb   : > { %2916 = vst.msk [vmem:[#allocation2 + $0xb0] sm:$0xff] %vm543_vm11, %v2907_v49 }
 0x3bd   : > { %v3384_v12 = vld [vmem:[#allocation2 + $0xa8] sm:$0xff] }
 0x3be   : > { %v3383_v27 = vld [vmem:[#allocation2 + $0xa0] sm:$0xff] }
 0x3bf   : > { %v4396_v20 = vpack.c.bf16 %v3384_v12, %v3383_v27 }
 0x3c1   : > { %4397 = vmatpush1.bf16.msra.mxu1 %v4396_v20  ;;  %v3386_v17 = vld [vmem:[#allocation2 + $0xb8] sm:$0xff] }
 0x3c2   : > { %4398 = vmatprep.subr.bf16.mxu1 %v4547_v40  ;;  %v3385_v62 = vld [vmem:[#allocation2 + $0xb0] sm:$0xff] }
 0x3c3   : > { %v4399_v51 = vpack.c.bf16 %v3386_v17, %v3385_v62 }
 0x3c5   : > { %4400 = vmatpush1.bf16.msra.mxu1 %v4399_v51 }
 0x3c6   : > { %4401 = vmatprep.subr.bf16.mxu1 %v4547_v40 }
 0x3e0   : > { %v4289_v16 = vpop.f32.mrb[68].mxu0 }
 0x3e1   : > { %3212 = vst.msk [vmem:[#allocation2 + $0xc8] sm:$0xff] %vm342_vm4, %v4289_v16  ;;  %v3052_v42 = vpop.f32.mrb[69].mxu0 }
 0x3e2   : > { %3211 = vst.msk [vmem:[#allocation2 + $0xc0] sm:$0xff] %vm342_vm4, %v3052_v42 }
 0x3e4   : > { %v4292_v10 = vpop.f32.mrb[70].mxu0 }
 0x3e5   : > { %3214 = vst.msk [vmem:[#allocation2 + $0xd8] sm:$0xff] %vm342_vm4, %v4292_v10  ;;  %v3062_v43 = vpop.f32.mrb[71].mxu0 }
 0x3e6   : > { %3213 = vst.msk [vmem:[#allocation2 + $0xd0] sm:$0xff] %vm342_vm4, %v3062_v43 }
 0x3e8   : > { %v4295_v19 = vpop.f32.mrb[72].mxu0 }
 0x3e9   : > { %v3072_v39 = vpop.f32.mrb[73].mxu0  ;;  %3221 = vrot.lane.b32.xlu1 %v4295_v19, %s4540_s15 }
 0x3ea   : > { %3219 = vrot.lane.b32.xlu0 %v3072_v39, %s4540_s15 }
 0x3ec   : > { %v4298_v46 = vpop.f32.mrb[74].mxu0 }
 0x3ed   : > { %v3082_v35 = vpop.f32.mrb[75].mxu0  ;;  %3225 = vrot.lane.b32.xlu1 %v4298_v46, %s4540_s15 }
 0x3ee   : > { %3223 = vrot.lane.b32.xlu0 %v3082_v35, %s4540_s15 }
 0x3f0   : > { %v4301_v11 = vpop.f32.mrb[76].mxu0 }
 0x3f1   : > { %v3092_v33 = vpop.f32.mrb[77].mxu0  ;;  %3241 = vrot.lane.b32.xlu1 %v4301_v11, %s4541_s16 }
 0x3f2   : > { %3239 = vrot.lane.b32.xlu0 %v3092_v33, %s4541_s16  ;;  %v3355_v33 = vld [vmem:[%s5983_s4] sm:$0xff] }
 0x3f4   : > { %v4304_v44 = vpop.f32.mrb[78].mxu0 }
 0x3f5   : > { %v3102_v21 = vpop.f32.mrb[79].mxu0  ;;  %3245 = vrot.lane.b32.xlu1 %v4304_v44, %s4541_s16  ;;  %v3358_v44 = vld [vmem:[%s5983_s4 + $0x18] sm:$0xff] }
 0x3f6   : > { %3243 = vrot.lane.b32.xlu0 %v3102_v21, %s4541_s16  ;;  %v3357_v21 = vld [vmem:[%s5983_s4 + $0x10] sm:$0xff]  ;;  %s242_s16 = sand.u32 1, %s4529_s22  }
 0x3f7   : > { %s5938_s9 = scalar_lea.sflag [#allocation4], %s242_s16 }
 0x3f8   : > { %v4307_v41 = vpop.f32.mrb[80].mxu0 }
 0x3f9   : > { %v3112_v56 = vpop.f32.mrb[81].mxu0  ;;  %3261 = vrot.lane.b32.xlu1 %v4307_v41, %s4542_s17  ;;  %v3359_v41 = vld [vmem:[%s5983_s4 + $0x20] sm:$0xff] }
 0x3fa   : > { %3259 = vrot.lane.b32.xlu0 %v3112_v56, %s4542_s17  ;;  %v3362_v56 = vld [vmem:[%s5983_s4 + $0x38] sm:$0xff] }
 0x3fc   : > { %v4310_v54 = vpop.f32.mrb[82].mxu0 }
 0x3fd   : > { %v3122_v38 = vpop.f32.mrb[83].mxu0  ;;  %3265 = vrot.lane.b32.xlu1 %v4310_v54, %s4542_s17  ;;  %v3361_v54 = vld [vmem:[%s5983_s4 + $0x30] sm:$0xff] }
 0x3fe   : > { %3263 = vrot.lane.b32.xlu0 %v3122_v38, %s4542_s17  ;;  %s3597_s17 = sshll.u32 %s242_s16, 5 }
 0x400   : > { %v4313_v26 = vpop.f32.mrb[84].mxu0 }
 0x401   : > { %v3132_v47 = vpop.f32.mrb[85].mxu0  ;;  %3281 = vrot.lane.b32.xlu1 %v4313_v26, %s4543_s18 }
 0x402   : > { %3279 = vrot.lane.b32.xlu0 %v3132_v47, %s4543_s18 }
 0x404   : > { %v4316_v9 = vpop.f32.mrb[86].mxu0 }
 0x405   : > { %v3142_v22 = vpop.f32.mrb[87].mxu0  ;;  %3285 = vrot.lane.b32.xlu1 %v4316_v9, %s4543_s18 }
 0x406   : > { %3283 = vrot.lane.b32.xlu0 %v3142_v22, %s4543_s18  ;;  %s244_s18 = scalar_lea.vmem [#allocation3], %s3597_s17 }
 0x408   : > { %v4319_v28 = vpop.f32.mrb[88].mxu0 }
 0x409   : > { %v3152_v53 = vpop.f32.mrb[89].mxu0  ;;  %3301 = vrot.lane.b32.xlu1 %v4319_v28, %s4544_s19 }
 0x40a   : > { %3299 = vrot.lane.b32.xlu0 %v3152_v53, %s4544_s19 }
 0x40c   : > { %v4322_v55 = vpop.f32.mrb[90].mxu0 }
 0x40d   : > { %v3162_v57 = vpop.f32.mrb[91].mxu0  ;;  %3305 = vrot.lane.b32.xlu1 %v4322_v55, %s4544_s19 }
 0x40e   : > { %3303 = vrot.lane.b32.xlu0 %v3162_v57, %s4544_s19  ;;  %s3531_s19 = sshll.u32 %s244_s18, 4  ;;  %s5931_s19 = int_to_ptr.vmem [resolvable:$true] %s3531_s19 }
 0x40f   : > { %s4475_s10 = scalar_lea.vmem %s5931_s19, 512 }
 0x410   : > { %v4325_v18 = vpop.f32.mrb[92].mxu0  ;;  %p4476_p11 = scmp.ne.s32.totalorder %s5931_s19, %s4475_s10 }
 0x411   : > { %v3172_v30 = vpop.f32.mrb[93].mxu0  ;;  %3321 = vrot.lane.b32.xlu1 %v4325_v18, %s4545_s20 }
 0x412   : > { %3319 = vrot.lane.b32.xlu0 %v3172_v30, %s4545_s20  ;;  %p4477_p12 = pnand %p4476_p11, %p4625_p5 }
 0x414   : > { %v4328_v13 = vpop.f32.mrb[94].mxu0  ;;  %p4478_p13 = pneg %p4477_p12 }
 0x415   : > { %v3182_v31 = vpop.f32.mrb[95].mxu0  ;;  %3325 = vrot.lane.b32.xlu1 %v4328_v13, %s4545_s20 }
 0x416   : > { %3323 = vrot.lane.b32.xlu0 %v3182_v31, %s4545_s20  ;;  %s3807_s20 = sshll.u32 %s4608_s25, 9  ;;  %s4549_s25 = smov [#allocation3]  }
 0x417   : > { %s5936_s29 = scalar_lea.hbm %s5985_s6, %s3807_s20  ;;  %s4479_s11 = sshll.u32 %s4549_s25, 4  ;;  %s4480_s11 = int_to_ptr.vmem [resolvable:$false] %s4479_s11 }
 0x418   : > { %v4331_v15 = vpop.f32.mrb[96].mxu0  ;;  %s4481_s12 = scalar_lea.vmem %s4480_s11, 1024  ;;  %p4482_p0 = scmp.lt.s32.totalorder %s5931_s19, %s4480_s11 }
 0x419   : > { %v3192_v32 = vpop.f32.mrb[97].mxu0  ;;  %3341 = vrot.lane.b32.xlu1 %v4331_v15, %s4546_s26  ;;  %p4483_p1 = scmp.lt.s32.totalorder %s4481_s12, %s4475_s10 }
 0x41a   : > { %3339 = vrot.lane.b32.xlu0 %v3192_v32, %s4546_s26 }
 0x41b   : > { %p4484_p2 = por %p4483_p1, %p4482_p0 }
 0x41c   : > { %v4334_v61 = vpop.f32.mrb[98].mxu0 }
 0x41d   : > { %v3202_v59 = vpop.f32.mrb[99].mxu0  ;;  %3345 = vrot.lane.b32.xlu1 %v4334_v61, %s4546_s26  ;;  %p4485_p3 = pnand %p4484_p2, %p4478_p13 }
 0x41e   : > { %3343 = vrot.lane.b32.xlu0 %v3202_v59, %s4546_s26 }
 0x421   : > { %3402 = vperm.xlu1 %4461, %v3392_v60  }
 0x422   : > { %3397 = vperm.xlu0 %4460, %v3391_v7  }
 0x425   : > { %3407 = vperm.xlu1 %4461, %v3393_v8  }
 0x426   : > { %3412 = vperm.xlu0 %4460, %v3394_v63  }
 0x45b   : > { %v3222_v3 = vpop.permute.xlu1 %3221 }
 0x45c   : > { %3232 = vst.msk [vmem:[#allocation2 + $0xc8] sm:$0xff] %vm417_vm5, %v3222_v3  ;;  %v3220_v25 = vpop.permute.xlu0 %3219 }
 0x45d   : > { %3231 = vst.msk [vmem:[#allocation2 + $0xc0] sm:$0xff] %vm417_vm5, %v3220_v25 }
 0x45f   : > { %v3226_v29 = vpop.permute.xlu1 %3225 }
 0x460   : > { %3234 = vst.msk [vmem:[#allocation2 + $0xd8] sm:$0xff] %vm417_vm5, %v3226_v29  ;;  %v3224_v52 = vpop.permute.xlu0 %3223 }
 0x461   : > { %3233 = vst.msk [vmem:[#allocation2 + $0xd0] sm:$0xff] %vm417_vm5, %v3224_v52 }
 0x463   : > { %v3242_v34 = vpop.permute.xlu1 %3241 }
 0x464   : > { %3252 = vst.msk [vmem:[#allocation2 + $0xc8] sm:$0xff] %vm438_vm6, %v3242_v34  ;;  %v3240_v0 = vpop.permute.xlu0 %3239 }
 0x465   : > { %3251 = vst.msk [vmem:[#allocation2 + $0xc0] sm:$0xff] %vm438_vm6, %v3240_v0 }
 0x467   : > { %v3246_v36 = vpop.permute.xlu1 %3245 }
 0x468   : > { %3254 = vst.msk [vmem:[#allocation2 + $0xd8] sm:$0xff] %vm438_vm6, %v3246_v36  ;;  %v3244_v1 = vpop.permute.xlu0 %3243 }
 0x469   : > { %3253 = vst.msk [vmem:[#allocation2 + $0xd0] sm:$0xff] %vm438_vm6, %v3244_v1 }
 0x46b   : > { %v3262_v50 = vpop.permute.xlu1 %3261 }
 0x46c   : > { %3272 = vst.msk [vmem:[#allocation2 + $0xc8] sm:$0xff] %vm459_vm7, %v3262_v50  ;;  %v3260_v2 = vpop.permute.xlu0 %3259 }
 0x46d   : > { %3271 = vst.msk [vmem:[#allocation2 + $0xc0] sm:$0xff] %vm459_vm7, %v3260_v2 }
 0x46f   : > { %v3266_v14 = vpop.permute.xlu1 %3265 }
 0x470   : > { %3274 = vst.msk [vmem:[#allocation2 + $0xd8] sm:$0xff] %vm459_vm7, %v3266_v14  ;;  %v3264_v4 = vpop.permute.xlu0 %3263 }
 0x471   : > { %3273 = vst.msk [vmem:[#allocation2 + $0xd0] sm:$0xff] %vm459_vm7, %v3264_v4 }
 0x473   : > { %v3282_v5 = vpop.permute.xlu1 %3281 }
 0x474   : > { %3292 = vst.msk [vmem:[#allocation2 + $0xc8] sm:$0xff] %vm480_vm8, %v3282_v5  ;;  %v3280_v6 = vpop.permute.xlu0 %3279 }
 0x475   : > { %3291 = vst.msk [vmem:[#allocation2 + $0xc0] sm:$0xff] %vm480_vm8, %v3280_v6 }
 0x477   : > { %v3286_v45 = vpop.permute.xlu1 %3285 }
 0x478   : > { %3294 = vst.msk [vmem:[#allocation2 + $0xd8] sm:$0xff] %vm480_vm8, %v3286_v45  ;;  %v3284_v23 = vpop.permute.xlu0 %3283 }
 0x479   : > { %3293 = vst.msk [vmem:[#allocation2 + $0xd0] sm:$0xff] %vm480_vm8, %v3284_v23 }
 0x47b   : > { %v3302_v24 = vpop.permute.xlu1 %3301 }
 0x47c   : > { %3312 = vst.msk [vmem:[#allocation2 + $0xc8] sm:$0xff] %vm501_vm9, %v3302_v24  ;;  %v3300_v48 = vpop.permute.xlu0 %3299 }
 0x47d   : > { %3311 = vst.msk [vmem:[#allocation2 + $0xc0] sm:$0xff] %vm501_vm9, %v3300_v48 }
 0x47f   : > { %v3306_v49 = vpop.permute.xlu1 %3305 }
 0x480   : > { %3314 = vst.msk [vmem:[#allocation2 + $0xd8] sm:$0xff] %vm501_vm9, %v3306_v49  ;;  %v3304_v12 = vpop.permute.xlu0 %3303 }
 0x481   : > { %3313 = vst.msk [vmem:[#allocation2 + $0xd0] sm:$0xff] %vm501_vm9, %v3304_v12 }
 0x483   : > { %v3322_v27 = vpop.permute.xlu1 %3321 }
 0x484   : > { %3332 = vst.msk [vmem:[#allocation2 + $0xc8] sm:$0xff] %vm522_vm10, %v3322_v27  ;;  %v3320_v20 = vpop.permute.xlu0 %3319 }
 0x485   : > { %3331 = vst.msk [vmem:[#allocation2 + $0xc0] sm:$0xff] %vm522_vm10, %v3320_v20 }
 0x487   : > { %v3326_v17 = vpop.permute.xlu1 %3325 }
 0x488   : > { %3334 = vst.msk [vmem:[#allocation2 + $0xd8] sm:$0xff] %vm522_vm10, %v3326_v17  ;;  %v3324_v62 = vpop.permute.xlu0 %3323 }
 0x489   : > { %3333 = vst.msk [vmem:[#allocation2 + $0xd0] sm:$0xff] %vm522_vm10, %v3324_v62 }
 0x48b   : > { %v3342_v51 = vpop.permute.xlu1 %3341 }
 0x48c   : > { %3352 = vst.msk [vmem:[#allocation2 + $0xc8] sm:$0xff] %vm543_vm11, %v3342_v51  ;;  %v3340_v16 = vpop.permute.xlu0 %3339 }
 0x48d   : > { %3351 = vst.msk [vmem:[#allocation2 + $0xc0] sm:$0xff] %vm543_vm11, %v3340_v16 }
 0x48f   : > { %v3346_v42 = vpop.permute.xlu1 %3345 }
 0x490   : > { %3354 = vst.msk [vmem:[#allocation2 + $0xd8] sm:$0xff] %vm543_vm11, %v3346_v42  ;;  %v3344_v10 = vpop.permute.xlu0 %3343 }
 0x491   : > { %3353 = vst.msk [vmem:[#allocation2 + $0xd0] sm:$0xff] %vm543_vm11, %v3344_v10 }
 0x493   : > { %v3388_v43 = vld [vmem:[#allocation2 + $0xc8] sm:$0xff] }
 0x494   : > { %v3387_v19 = vld [vmem:[#allocation2 + $0xc0] sm:$0xff] }
 0x495   : > { %v4402_v39 = vpack.c.bf16 %v3388_v43, %v3387_v19 }
 0x497   : > { %4403 = vmatpush1.bf16.msra.mxu1 %v4402_v39  ;;  %v3390_v46 = vld [vmem:[#allocation2 + $0xd8] sm:$0xff] }
 0x498   : > { %4404 = vmatprep.subr.bf16.mxu1 %v4547_v40  ;;  %v3389_v35 = vld [vmem:[#allocation2 + $0xd0] sm:$0xff]  ;;  %v3360_v40 = vld [vmem:[%s5983_s4 + $0x28] sm:$0xff] }
 0x499   : > { %v4405_v11 = vpack.c.bf16 %v3390_v46, %v3389_v35 }
 0x49b   : > { %4406 = vmatpush1.bf16.msra.mxu1 %v4405_v11 }
 0x49e   : > { %3493 = vmatmul.mubr.f32.vlgmr.msra.gmra.mrb[94].mxu1 %v3355_v33 }
 0x49f   : > { %3798 = vmatprep.mubr.msk.f32.mxu1 %vm3415_vm12, %v3358_v44 }
 0x4a0   : > { %v3403_v47 = vpop.permute.xlu1 %3402 }
 0x4a1   : > { %v3398_v38 = vpop.permute.xlu0 %3397 }
 0x4a2   : > { %3498 = vmatmul.mubr.f32.gmra.mrb[96].mxu1 %v3357_v21 }
 0x4a3   : > { %3799 = vmatprep.mubr.msk.f32.mxu1 %vm3415_vm12, %v3360_v40 }
 0x4a4   : > { %v3408_v57 = vpop.permute.xlu1 %3407 }
 0x4a5   : > { %v3413_v31 = vpop.permute.xlu0 %3412 }
 0x4a6   : > { %3503 = vmatmul.mubr.f32.gmra.mrb[98].mxu1 %v3359_v41 }
 0x4a7   : > { %3800 = vmatprep.mubr.msk.f32.mxu1 %vm3415_vm12, %v3362_v56 }
 0x4aa   : > { %3508 = vmatmul.mubr.f32.gmra.mrb[100].mxu1 %v3361_v54 }
 0x571   : > { %v3494_v26 = vpop.f32.mrb[94].mxu1 }
 0x572   : > { %v3495_v9 = vadd.f32 %v3494_v26, %v3398_v38  ;;  %v3496_v22 = vpop.f32.mrb[95].mxu1 }
 0x574   : > { %3513 = vst [vmem:[%s244_s18] sm:$0xff] %v3495_v9 }
 0x575   : > { %v3499_v28 = vpop.f32.mrb[96].mxu1 }
 0x576   : > { %v3500_v53 = vadd.f32 %v3499_v28, %v3403_v47  ;;  %v3501_v55 = vpop.f32.mrb[97].mxu1 }
 0x578   : > { %3514 = vst [vmem:[%s244_s18 + $0x8] sm:$0xff] %v3500_v53 }
 0x579   : > { %v3504_v18 = vpop.f32.mrb[98].mxu1 }
 0x57a   : > { %v3506_v30 = vpop.f32.mrb[99].mxu1  ;;  %v3505_v13 = vadd.f32 %v3504_v18, %v3408_v57 }
 0x57c   : > { %3515 = vst [vmem:[%s244_s18 + $0x10] sm:$0xff] %v3505_v13 }
 0x57d   : > { %v3509_v15 = vpop.f32.mrb[100].mxu1 }
 0x57e   : > { %v3510_v32 = vadd.f32 %v3509_v15, %v3413_v31  ;;  %v3511_v58 = vpop.f32.mrb[101].mxu1 }
 0x580   : > { %3516 = vst [vmem:[%s244_s18 + $0x18] sm:$0xff] %v3510_v32 }
 0x581   : > { %4488 = shalt.err (!%p4485_p3)
}
 0x582   : > { %s4489_s13 = scalar_lea.hbm %s5936_s29, 512  ;;  %s4493_s16 = scalar_lea.hbm %s5985_s6, 1024 }
 0x583   : > { %p4490_p4 = scmp.ne.s32.totalorder %s5936_s29, %s4489_s13  ;;  %p4494_p9 = scmp.lt.u32.totalorder %s5936_s29, %s5985_s6 }
 0x584   : > { %p4495_p10 = scmp.lt.u32.totalorder %s4493_s16, %s4489_s13  ;;  %p4497_p12 = scmp.lt.u32.totalorder %s4489_s13, %s5936_s29 }
 0x585   : > { %p4491_p7 = pnand %p4490_p4, %p4625_p5 }
 0x586   : > { %p4496_p11 = por %p4495_p10, %p4494_p9 }
 0x587   : > { %p4492_p8 = pneg %p4491_p7 }
 0x588   : > { %p4498_p13 = por %p4497_p12, %p4496_p11 }
 0x58a   : > { %p4499_p0 = pnand %p4498_p13, %p4492_p8 }
 0x58c   : > { %4502 = shalt.err (!%p4499_p0)
}
 0x58d   : > { %s4550_s20 = smov 128   ;;  %s4551_s26 = smov 8  }
 0x58e   : > { %4409 = dma.vmem_to_hbm [thread:$0]  (%p4625_p5), %s5931_s19, 512, %s5936_s29, %s5938_s9, %s4550_s20, %s4550_s20, %s4551_s26  }
 0x58f PF: > { %p4415_p1 = scmp.ge.s32.totalorder %s4537_s24, 2  ;;  %s3546_s28 = sand.u32 1, %s4525_s21  }
 0x590   : > { %s3547_s10 = scalar_lea.sflag [#allocation4], %s3546_s28 }
 0x591   : > { %p4412_p2 = pnand %p4415_p1, %p4629_p6 }
 0x593   : > { %4520 = dma.done.wait (!%p4412_p2), %s3547_s10, 512  }
 0x594   : > { %4522 = vsyncadd (!%p4412_p2), %s3547_s10, 4294966784  ;;  %p16_p3 = scmp.ge.s32.totalorder %s4612_s27, 4   ;;  %s6055_s21 = smov %s4529_s22 }
 0x595   : > { %s6056_s22 = smov %s4533_s23  ;;  %s6057_s23 = smov %s4623_s30 }
 0x596   : > { %s6058_s24 = smov %s4612_s27  ;;  %18 = sbr.rel (!%p16_p3) target bundleno = 3 (0x3), region = 80 }
 0x59d   :  { %3552 = vsyncpa [#allocation4], 1 }
 0x59e   :  { %3554 = vsyncpa [#allocation4 + $0x1], 1 }

</bundles_post_ra>
